<compile_context>
chip_gen: v7x
topology: tpu7x:2x2x1
jax: 0.10.0
libtpu: 0.0.40
codegen_flags: <defaults>
</compile_context>

<pallas_src>
import functools

import jax
import jax.numpy as jnp
from jax.experimental import pallas as pl
from jax.experimental.pallas import tpu as pltpu


NEG_BIG = -1e30
LEAKY_SLOPE = 0.2


def _round_up(x, m):
    return (x + m - 1) // m * m


def _vmem_budget_bytes():
    """Per-chip VMEM budget with headroom (v7x has 64 MiB, v5e/v6e 128 MiB)."""
    cap = 64 * 1024 * 1024  # conservative default (v7x physical VMEM)
    try:
        cap = int(pltpu.get_tpu_info().vmem_capacity_bytes)
    except Exception:
        try:
            kind = jax.devices()[0].device_kind.lower()
            if ("v4" in kind) or ("v5" in kind) or ("v6" in kind):
                cap = 128 * 1024 * 1024
        except Exception:
            pass
    return min(int(cap * 0.85), 112 * 1024 * 1024)


def _pick_tile_m(n_pad, hf_plus, heads, vmem_budget):
    """Largest destination-row tile (multiple of 128, divisor of n_pad) that
    fits the VMEM budget and, when possible, leaves >=2 grid steps so the
    'parallel' axis can be split across v7x's two TensorCores."""
    # Resident (grid-invariant) operands: bf16 [x'|1] values + f32 alpha_src,
    # both double-buffered by the pipeline, plus slack.
    resident = 2 * (n_pad * hf_plus * 2 + heads * n_pad * 4) + (1 << 20)
    # Per destination row: adj bf16 x2 buffers + f32 upcast + e/p temps + p bf16.
    per_row = 18 * n_pad + 1024
    cap_rows = max(128, (vmem_budget - resident) // per_row)
    for cand in range(n_pad, 127, -128):
        if n_pad % cand:
            continue
        if cand > 512 or cand > cap_rows:
            continue
        if n_pad // cand >= 2 or n_pad == 128:
            return cand
    return 128


def gat_conv_kernel(xpv_ref, asrc_ref, adst_ref, bias_ref, adj_ref, out_ref,
                    *, heads, out_per_head, apply_relu):
    """One destination-row tile of a dense GATConv layer.

    xpv_ref  : (N_pad, H*(F_out+1))  bf16, per-head blocks [x'_h | 1]
    asrc_ref : (H, N_pad)            f32 source attention scalars (transposed)
    adst_ref : (TM, H)               f32 destination attention scalars
    bias_ref : (1, H*F_out)          output bias
    adj_ref  : (TM, N_pad)           additive adjacency bias (0 / -1e30), bf16
    out_ref  : (TM, H*F_out)         concatenated per-head outputs
    """
    fpp = out_per_head + 1
    adj = adj_ref[...].astype(jnp.float32)        # one upcast per tile, all heads
    a_dst = adst_ref[...]                         # (TM, H)
    a_src = asrc_ref[...]                         # (H, N_pad)

    outs = []
    for h in range(heads):  # static unroll; H is small (4 and 1)
        # e[i, j] = LeakyReLU(alpha_dst[i] + alpha_src[j]) + mask bias
        e = a_dst[:, h:h + 1] + a_src[h:h + 1, :]                    # (TM, N_pad)
        e = jnp.maximum(e, LEAKY_SLOPE * e)                          # slope < 1
        e = e + adj

        # Softmax over sources; masked entries underflow to exactly 0.
        m = jnp.max(e, axis=1, keepdims=True)
        p = jnp.exp(e - m)                                           # f32

        # Aggregation + denominator in one MXU matmul (ones column folded in).
        xv = xpv_ref[:, h * fpp:(h + 1) * fpp]                       # (N_pad, F_out+1)
        res = jnp.dot(p.astype(jnp.bfloat16), xv,
                      preferred_element_type=jnp.float32)            # (TM, F_out+1)
        inv = pl.reciprocal(res[:, out_per_head:], approx=True)      # (TM, 1)
        outs.append(res[:, :out_per_head] * inv)

    out_tile = outs[0] if heads == 1 else jnp.concatenate(outs, axis=-1)
    out_tile = out_tile + bias_ref[...]
    if apply_relu:
        out_tile = jnp.maximum(out_tile, 0.0)
    out_ref[...] = out_tile.astype(out_ref.dtype)                    # one store/tile


def gat_conv(x_pad, adj_bias, w, a_src, a_dst, bias, *, heads, out_per_head,
             apply_relu=False, vmem_budget=None):
    n_pad, _ = x_pad.shape
    hf = heads * out_per_head
    fpp = out_per_head + 1

    # ---- grid-invariant precompute (once per layer, plain XLA) ----
    xp = jnp.dot(x_pad, w)                                           # (N_pad, HF) f32
    xp_h = xp.reshape(n_pad, heads, out_per_head)
    alpha_src_t = jnp.einsum("nhd,hd->hn", xp_h, a_src)              # (H, N_pad)
    alpha_dst = jnp.einsum("nhd,hd->nh", xp_h, a_dst)                # (N_pad, H)
    xpv = jnp.concatenate(
        [xp_h, jnp.ones((n_pad, heads, 1), xp.dtype)], axis=-1
    ).reshape(n_pad, heads * fpp).astype(jnp.bfloat16)               # [x'_h | 1]

    if vmem_budget is None:
        vmem_budget = _vmem_budget_bytes()
    tile_m = _pick_tile_m(n_pad, heads * fpp, heads, vmem_budget)
    grid = (n_pad // tile_m,)

    kernel = functools.partial(
        gat_conv_kernel, heads=heads, out_per_head=out_per_head,
        apply_relu=apply_relu)

    return pl.pallas_call(
        kernel,
        out_shape=jax.ShapeDtypeStruct((n_pad, hf), jnp.float32),
        grid_spec=pltpu.PrefetchScalarGridSpec(
            num_scalar_prefetch=0,
            grid=grid,
            in_specs=[
                pl.BlockSpec((n_pad, heads * fpp), lambda i: (0, 0)),  # [x'|1]
                pl.BlockSpec((heads, n_pad), lambda i: (0, 0)),        # alpha_src^T
                pl.BlockSpec((tile_m, heads), lambda i: (i, 0)),       # alpha_dst rows
                pl.BlockSpec((1, hf), lambda i: (0, 0)),               # bias
                pl.BlockSpec((tile_m, n_pad), lambda i: (i, 0)),       # adj bias rows
            ],
            out_specs=pl.BlockSpec((tile_m, hf), lambda i: (i, 0)),
        ),
        compiler_params=pltpu.CompilerParams(
            dimension_semantics=("parallel",),     # megacore row split on v7x
            vmem_limit_bytes=int(vmem_budget),
        ),
    )(xpv, alpha_src_t, alpha_dst, bias, adj_bias)


def edge_index_to_adj_bias(edge_index, num_nodes, n_pad):
    """Additive adjacency bias (0 for edges/self-loops, -1e30 otherwise), bf16."""
    adj = jnp.zeros((num_nodes, num_nodes), jnp.float32)
    adj = adj.at[edge_index[1], edge_index[0]].set(1.0)          # adj[dst, src]
    adj = jnp.maximum(adj, jnp.eye(num_nodes, dtype=jnp.float32))
    adj = jnp.pad(adj, ((0, n_pad - num_nodes), (0, n_pad - num_nodes)))
    return jnp.where(adj > 0, 0.0, NEG_BIG).astype(jnp.bfloat16)


def init_gat_params(key, in_dim, hid_dim, head, out_dim):
    ks = jax.random.split(key, 8)

    def glorot(k, shape):
        fan_in, fan_out = shape[0], shape[-1]
        scale = jnp.sqrt(6.0 / (fan_in + fan_out))
        return jax.random.uniform(k, shape, jnp.float32, -scale, scale)

    return {
        # conv1: GATConv(in_dim, hid_dim, heads=head)
        "w1": glorot(ks[0], (in_dim, head * hid_dim)),
        "a_src1": glorot(ks[1], (head, hid_dim)),
        "a_dst1": glorot(ks[2], (head, hid_dim)),
        "b1": jnp.zeros((1, head * hid_dim), jnp.float32),
        # conv2: GATConv(hid_dim * head, out_dim, heads=1)
        "w2": glorot(ks[3], (head * hid_dim, out_dim)),
        "a_src2": glorot(ks[4], (1, out_dim)),
        "a_dst2": glorot(ks[5], (1, out_dim)),
        "b2": jnp.zeros((1, out_dim), jnp.float32),
    }


def gat_net_forward(params, x, edge_index, *, hid_dim, head, out_dim):
    n = x.shape[0]
    n_pad = _round_up(n, 128)            # lane-dense adjacency rows
    x_pad = jnp.pad(x, ((0, n_pad - n), (0, 0)))
    adj_bias = edge_index_to_adj_bias(edge_index, n, n_pad)
    vmem_budget = _vmem_budget_bytes()

    # conv1 + ReLU fused in the kernel epilogue.
    h1 = gat_conv(x_pad, adj_bias, params["w1"], params["a_src1"],
                  params["a_dst1"], params["b1"],
                  heads=head, out_per_head=hid_dim, apply_relu=True,
                  vmem_budget=vmem_budget)
    # F.dropout(training=False) is identity.
    out = gat_conv(h1, adj_bias, params["w2"], params["a_src2"],
                   params["a_dst2"], params["b2"],
                   heads=1, out_per_head=out_dim, apply_relu=False,
                   vmem_budget=vmem_budget)
    return out[:n]


if __name__ == "__main__":
    in_dim, hid_dim, head, out_dim = 16, 8, 4, 4
    num_nodes, num_edges = 8, 16

    key = jax.random.PRNGKey(0)
    k_x, k_e, k_p = jax.random.split(key, 3)

    x = jax.random.normal(k_x, (num_nodes, in_dim), jnp.float32)
    edge_index = jax.random.randint(k_e, (2, num_edges), 0, num_nodes,
                                    dtype=jnp.int32)
    params = init_gat_params(k_p, in_dim, hid_dim, head, out_dim)

    out = gat_net_forward(params, x, edge_index,
                          hid_dim=hid_dim, head=head, out_dim=out_dim)
    out = jax.block_until_ready(out)
    assert out.shape == (num_nodes, out_dim)
    assert bool(jnp.all(jnp.isfinite(out)))
    print("KERNEL_OK")
</pallas_src>

<mosaic_0001>
module attributes {stable_mosaic.version = 11 : i64} {
  func.func @gat_conv_kernel(%arg0: i32, %arg1: memref<128x36xbf16, #tpu.memory_space<vmem>>, %arg2: memref<4x128xf32, #tpu.memory_space<vmem>>, %arg3: memref<128x4xf32, #tpu.memory_space<vmem>>, %arg4: memref<1x32xf32, #tpu.memory_space<vmem>>, %arg5: memref<128x128xbf16, #tpu.memory_space<vmem>>, %arg6: memref<128x32xf32, #tpu.memory_space<vmem>>) attributes {dimension_semantics = [#tpu.dimension_semantics<parallel>], iteration_bounds = array<i64: 1>, scalar_prefetch = 0 : i64, scratch_operands = 0 : i64, tpu.core_type = #tpu.core_type<tc>, window_params = [{pipeline_mode = #tpu.pipeline_mode<synchronous>, transform_indices = @transform_0, window_bounds = array<i64: 128, 36>}, {pipeline_mode = #tpu.pipeline_mode<synchronous>, transform_indices = @transform_1, window_bounds = array<i64: 4, 128>}, {transform_indices = @transform_2, window_bounds = array<i64: 128, 4>}, {pipeline_mode = #tpu.pipeline_mode<synchronous>, transform_indices = @transform_3, window_bounds = array<i64: 1, 32>}, {transform_indices = @transform_4, window_bounds = array<i64: 128, 128>}, {transform_indices = @transform_5, window_bounds = array<i64: 128, 32>}]} {
    %c0 = arith.constant 0 : index
    %c0_0 = arith.constant 0 : index
    %0 = vector.load %arg5[%c0, %c0_0] : memref<128x128xbf16, #tpu.memory_space<vmem>>, vector<128x128xbf16>
    %1 = arith.extf %0 : vector<128x128xbf16> to vector<128x128xf32>
    %c0_1 = arith.constant 0 : index
    %c0_2 = arith.constant 0 : index
    %2 = vector.load %arg3[%c0_1, %c0_2] : memref<128x4xf32, #tpu.memory_space<vmem>>, vector<128x4xf32>
    %c0_3 = arith.constant 0 : index
    %c0_4 = arith.constant 0 : index
    %3 = vector.load %arg2[%c0_3, %c0_4] : memref<4x128xf32, #tpu.memory_space<vmem>>, vector<4x128xf32>
    %4 = vector.extract_strided_slice %2 {offsets = [0, 0], sizes = [128, 1], strides = [1, 1]} : vector<128x4xf32> to vector<128x1xf32>
    %5 = vector.extract_strided_slice %3 {offsets = [0, 0], sizes = [1, 128], strides = [1, 1]} : vector<4x128xf32> to vector<1x128xf32>
    %6 = vector.broadcast %4 : vector<128x1xf32> to vector<128x128xf32>
    %7 = vector.broadcast %5 : vector<1x128xf32> to vector<128x128xf32>
    %8 = arith.addf %6, %7 : vector<128x128xf32>
    %cst = arith.constant 2.000000e-01 : f32
    %9 = vector.broadcast %cst : f32 to vector<128x128xf32>
    %10 = arith.mulf %9, %8 : vector<128x128xf32>
    %11 = arith.maximumf %8, %10 : vector<128x128xf32>
    %12 = arith.addf %11, %1 : vector<128x128xf32>
    %cst_5 = arith.constant dense<0xFF800000> : vector<128xf32>
    %13 = vector.multi_reduction <maximumf>, %12, %cst_5 [1] : vector<128x128xf32> to vector<128xf32>
    %14 = vector.shape_cast %13 : vector<128xf32> to vector<128x1xf32>
    %15 = vector.broadcast %14 : vector<128x1xf32> to vector<128x128xf32>
    %16 = arith.subf %12, %15 : vector<128x128xf32>
    %17 = math.exp %16 : vector<128x128xf32>
    %c0_6 = arith.constant 0 : index
    %c0_7 = arith.constant 0 : index
    %18 = vector.load %arg1[%c0_6, %c0_7] : memref<128x36xbf16, #tpu.memory_space<vmem>>, vector<128x9xbf16>
    %19 = arith.truncf %17 : vector<128x128xf32> to vector<128x128xbf16>
    %cst_8 = arith.constant dense<0.000000e+00> : vector<128x9xf32>
    %20 = tpu.matmul %19, %18, %cst_8 {dimension_numbers = #tpu.dot_dimension_numbers<[1], [0], [0], [1], [0, 0, 1, 1], [], []>} : vector<128x128xbf16>, vector<128x9xbf16>, vector<128x9xf32> -> vector<128x9xf32>
    %21 = vector.extract_strided_slice %20 {offsets = [0, 8], sizes = [128, 1], strides = [1, 1]} : vector<128x9xf32> to vector<128x1xf32>
    %22 = tpu.reciprocal %21 {approx = true} : vector<128x1xf32> -> vector<128x1xf32>
    %23 = vector.extract_strided_slice %20 {offsets = [0, 0], sizes = [128, 8], strides = [1, 1]} : vector<128x9xf32> to vector<128x8xf32>
    %24 = vector.broadcast %22 : vector<128x1xf32> to vector<128x8xf32>
    %25 = arith.mulf %23, %24 : vector<128x8xf32>
    %26 = vector.extract_strided_slice %2 {offsets = [0, 1], sizes = [128, 1], strides = [1, 1]} : vector<128x4xf32> to vector<128x1xf32>
    %27 = vector.extract_strided_slice %3 {offsets = [1, 0], sizes = [1, 128], strides = [1, 1]} : vector<4x128xf32> to vector<1x128xf32>
    %28 = vector.broadcast %26 : vector<128x1xf32> to vector<128x128xf32>
    %29 = vector.broadcast %27 : vector<1x128xf32> to vector<128x128xf32>
    %30 = arith.addf %28, %29 : vector<128x128xf32>
    %cst_9 = arith.constant 2.000000e-01 : f32
    %31 = vector.broadcast %cst_9 : f32 to vector<128x128xf32>
    %32 = arith.mulf %31, %30 : vector<128x128xf32>
    %33 = arith.maximumf %30, %32 : vector<128x128xf32>
    %34 = arith.addf %33, %1 : vector<128x128xf32>
    %cst_10 = arith.constant dense<0xFF800000> : vector<128xf32>
    %35 = vector.multi_reduction <maximumf>, %34, %cst_10 [1] : vector<128x128xf32> to vector<128xf32>
    %36 = vector.shape_cast %35 : vector<128xf32> to vector<128x1xf32>
    %37 = vector.broadcast %36 : vector<128x1xf32> to vector<128x128xf32>
    %38 = arith.subf %34, %37 : vector<128x128xf32>
    %39 = math.exp %38 : vector<128x128xf32>
    %c0_11 = arith.constant 0 : index
    %c9 = arith.constant 9 : index
    %40 = vector.load %arg1[%c0_11, %c9] : memref<128x36xbf16, #tpu.memory_space<vmem>>, vector<128x9xbf16>
    %41 = arith.truncf %39 : vector<128x128xf32> to vector<128x128xbf16>
    %cst_12 = arith.constant dense<0.000000e+00> : vector<128x9xf32>
    %42 = tpu.matmul %41, %40, %cst_12 {dimension_numbers = #tpu.dot_dimension_numbers<[1], [0], [0], [1], [0, 0, 1, 1], [], []>} : vector<128x128xbf16>, vector<128x9xbf16>, vector<128x9xf32> -> vector<128x9xf32>
    %43 = vector.extract_strided_slice %42 {offsets = [0, 8], sizes = [128, 1], strides = [1, 1]} : vector<128x9xf32> to vector<128x1xf32>
    %44 = tpu.reciprocal %43 {approx = true} : vector<128x1xf32> -> vector<128x1xf32>
    %45 = vector.extract_strided_slice %42 {offsets = [0, 0], sizes = [128, 8], strides = [1, 1]} : vector<128x9xf32> to vector<128x8xf32>
    %46 = vector.broadcast %44 : vector<128x1xf32> to vector<128x8xf32>
    %47 = arith.mulf %45, %46 : vector<128x8xf32>
    %48 = vector.extract_strided_slice %2 {offsets = [0, 2], sizes = [128, 1], strides = [1, 1]} : vector<128x4xf32> to vector<128x1xf32>
    %49 = vector.extract_strided_slice %3 {offsets = [2, 0], sizes = [1, 128], strides = [1, 1]} : vector<4x128xf32> to vector<1x128xf32>
    %50 = vector.broadcast %48 : vector<128x1xf32> to vector<128x128xf32>
    %51 = vector.broadcast %49 : vector<1x128xf32> to vector<128x128xf32>
    %52 = arith.addf %50, %51 : vector<128x128xf32>
    %cst_13 = arith.constant 2.000000e-01 : f32
    %53 = vector.broadcast %cst_13 : f32 to vector<128x128xf32>
    %54 = arith.mulf %53, %52 : vector<128x128xf32>
    %55 = arith.maximumf %52, %54 : vector<128x128xf32>
    %56 = arith.addf %55, %1 : vector<128x128xf32>
    %cst_14 = arith.constant dense<0xFF800000> : vector<128xf32>
    %57 = vector.multi_reduction <maximumf>, %56, %cst_14 [1] : vector<128x128xf32> to vector<128xf32>
    %58 = vector.shape_cast %57 : vector<128xf32> to vector<128x1xf32>
    %59 = vector.broadcast %58 : vector<128x1xf32> to vector<128x128xf32>
    %60 = arith.subf %56, %59 : vector<128x128xf32>
    %61 = math.exp %60 : vector<128x128xf32>
    %c0_15 = arith.constant 0 : index
    %c18 = arith.constant 18 : index
    %62 = vector.load %arg1[%c0_15, %c18] : memref<128x36xbf16, #tpu.memory_space<vmem>>, vector<128x9xbf16>
    %63 = arith.truncf %61 : vector<128x128xf32> to vector<128x128xbf16>
    %cst_16 = arith.constant dense<0.000000e+00> : vector<128x9xf32>
    %64 = tpu.matmul %63, %62, %cst_16 {dimension_numbers = #tpu.dot_dimension_numbers<[1], [0], [0], [1], [0, 0, 1, 1], [], []>} : vector<128x128xbf16>, vector<128x9xbf16>, vector<128x9xf32> -> vector<128x9xf32>
    %65 = vector.extract_strided_slice %64 {offsets = [0, 8], sizes = [128, 1], strides = [1, 1]} : vector<128x9xf32> to vector<128x1xf32>
    %66 = tpu.reciprocal %65 {approx = true} : vector<128x1xf32> -> vector<128x1xf32>
    %67 = vector.extract_strided_slice %64 {offsets = [0, 0], sizes = [128, 8], strides = [1, 1]} : vector<128x9xf32> to vector<128x8xf32>
    %68 = vector.broadcast %66 : vector<128x1xf32> to vector<128x8xf32>
    %69 = arith.mulf %67, %68 : vector<128x8xf32>
    %70 = vector.extract_strided_slice %2 {offsets = [0, 3], sizes = [128, 1], strides = [1, 1]} : vector<128x4xf32> to vector<128x1xf32>
    %71 = vector.extract_strided_slice %3 {offsets = [3, 0], sizes = [1, 128], strides = [1, 1]} : vector<4x128xf32> to vector<1x128xf32>
    %72 = vector.broadcast %70 : vector<128x1xf32> to vector<128x128xf32>
    %73 = vector.broadcast %71 : vector<1x128xf32> to vector<128x128xf32>
    %74 = arith.addf %72, %73 : vector<128x128xf32>
    %cst_17 = arith.constant 2.000000e-01 : f32
    %75 = vector.broadcast %cst_17 : f32 to vector<128x128xf32>
    %76 = arith.mulf %75, %74 : vector<128x128xf32>
    %77 = arith.maximumf %74, %76 : vector<128x128xf32>
    %78 = arith.addf %77, %1 : vector<128x128xf32>
    %cst_18 = arith.constant dense<0xFF800000> : vector<128xf32>
    %79 = vector.multi_reduction <maximumf>, %78, %cst_18 [1] : vector<128x128xf32> to vector<128xf32>
    %80 = vector.shape_cast %79 : vector<128xf32> to vector<128x1xf32>
    %81 = vector.broadcast %80 : vector<128x1xf32> to vector<128x128xf32>
    %82 = arith.subf %78, %81 : vector<128x128xf32>
    %83 = math.exp %82 : vector<128x128xf32>
    %c0_19 = arith.constant 0 : index
    %c27 = arith.constant 27 : index
    %84 = vector.load %arg1[%c0_19, %c27] : memref<128x36xbf16, #tpu.memory_space<vmem>>, vector<128x9xbf16>
    %85 = arith.truncf %83 : vector<128x128xf32> to vector<128x128xbf16>
    %cst_20 = arith.constant dense<0.000000e+00> : vector<128x9xf32>
    %86 = tpu.matmul %85, %84, %cst_20 {dimension_numbers = #tpu.dot_dimension_numbers<[1], [0], [0], [1], [0, 0, 1, 1], [], []>} : vector<128x128xbf16>, vector<128x9xbf16>, vector<128x9xf32> -> vector<128x9xf32>
    %87 = vector.extract_strided_slice %86 {offsets = [0, 8], sizes = [128, 1], strides = [1, 1]} : vector<128x9xf32> to vector<128x1xf32>
    %88 = tpu.reciprocal %87 {approx = true} : vector<128x1xf32> -> vector<128x1xf32>
    %89 = vector.extract_strided_slice %86 {offsets = [0, 0], sizes = [128, 8], strides = [1, 1]} : vector<128x9xf32> to vector<128x8xf32>
    %90 = vector.broadcast %88 : vector<128x1xf32> to vector<128x8xf32>
    %91 = arith.mulf %89, %90 : vector<128x8xf32>
    %92 = tpu.concatenate %25, %47, %69, %91 in 1 : vector<128x8xf32>, vector<128x8xf32>, vector<128x8xf32>, vector<128x8xf32> -> vector<128x32xf32>
    %c0_21 = arith.constant 0 : index
    %c0_22 = arith.constant 0 : index
    %93 = vector.load %arg4[%c0_21, %c0_22] : memref<1x32xf32, #tpu.memory_space<vmem>>, vector<1x32xf32>
    %94 = vector.broadcast %93 : vector<1x32xf32> to vector<128x32xf32>
    %95 = arith.addf %92, %94 : vector<128x32xf32>
    %cst_23 = arith.constant 0.000000e+00 : f32
    %96 = vector.broadcast %cst_23 : f32 to vector<128x32xf32>
    %97 = arith.maximumf %95, %96 : vector<128x32xf32>
    %c0_24 = arith.constant 0 : index
    %c0_25 = arith.constant 0 : index
    %98 = vector.load %arg6[%c0_24, %c0_25] : memref<128x32xf32, #tpu.memory_space<vmem>>, vector<128x32xf32>
    tpu.vector_store %arg6[%c0_24, %c0_25], %97 {strides = array<i32>} : memref<128x32xf32, #tpu.memory_space<vmem>>, vector<128x32xf32>,
    return
  }
  func.func @transform_0(%arg0: i32) -> (i32, i32) {
    %c0_i32 = arith.constant 0 : i32
    %c0_i32_0 = arith.constant 0 : i32
    %c0_i32_1 = arith.constant 0 : i32
    return %c0_i32, %c0_i32_0 : i32, i32
  }
  func.func @transform_1(%arg0: i32) -> (i32, i32) {
    %c0_i32 = arith.constant 0 : i32
    %c0_i32_0 = arith.constant 0 : i32
    %c0_i32_1 = arith.constant 0 : i32
    return %c0_i32, %c0_i32_0 : i32, i32
  }
  func.func @transform_2(%arg0: i32) -> (i32, i32) {
    %c0_i32 = arith.constant 0 : i32
    %c0_i32_0 = arith.constant 0 : i32
    return %arg0, %c0_i32 : i32, i32
  }
  func.func @transform_3(%arg0: i32) -> (i32, i32) {
    %c0_i32 = arith.constant 0 : i32
    %c0_i32_0 = arith.constant 0 : i32
    %c0_i32_1 = arith.constant 0 : i32
    return %c0_i32, %c0_i32_0 : i32, i32
  }
  func.func @transform_4(%arg0: i32) -> (i32, i32) {
    %c0_i32 = arith.constant 0 : i32
    %c0_i32_0 = arith.constant 0 : i32
    return %arg0, %c0_i32 : i32, i32
  }
  func.func @transform_5(%arg0: i32) -> (i32, i32) {
    %c0_i32 = arith.constant 0 : i32
    %c0_i32_0 = arith.constant 0 : i32
    return %arg0, %c0_i32 : i32, i32
  }
}

</mosaic_0001>

<bundles_post_ra>
// kernel: tpu_custom_call.1
= control target key start
LH: loop header
LB: loop body
LE: loop exit
PB: predicated region body
PF: predicated region fallthrough
CT: control target
= control target key end

     0   :  { %v2780_v0 = vmov 0   ;;  %v2781_v17 = vmov 1   ;;  %v4264_v21 = vmov 2   ;;  %v150_v25 = vlaneseq  ;;  %s2785_s8 = smov 110   ;;  %s2786_s9 = smov 101   ;;  %s4258_s2 = inlined_call_operand.vmem [shape: f32[128,4], index: 2, kind: input, shape index: {}]   ;;  %s4259_s0 = inlined_call_operand.vmem [shape: bf16[128,36], index: 0, kind: input, shape index: {}]   ;;  %s4260_s1 = inlined_call_operand.vmem [shape: f32[4,128], index: 1, kind: input, shape index: {}]   ;;  %s4261_s4 = inlined_call_operand.vmem [shape: bf16[128,128], index: 4, kind: input, shape index: {}]   ;;  %s4262_s3 = inlined_call_operand.vmem [shape: f32[1,32], index: 3, kind: input, shape index: {}]   ;;  %s4263_s5 = inlined_call_operand.vmem [shape: f32[128,32], index: 5, kind: output, shape index: {}]  }
   0x1   :  { %2493 = vset.pattern.permute.xlu1 %v2780_v0  ;;  %2492 = vset.pattern.permute.xlu0 %v2780_v0  ;;  %v2824_v1 = vld [vmem:[%s4258_s2 + $0x10] sm:$0xff]  ;;  %v2829_v2 = vld [vmem:[%s4258_s2] sm:$0xff]  ;;  %v2836_v3 = vld [vmem:[%s4258_s2 + $0x18] sm:$0xff]  ;;  %s2789_s23 = smov 16   ;;  %s2790_s24 = smov 24   ;;  %vm2130_vm0 = vcmask 64512  }
   0x2   :  { %82 = vperm.xlu1 %2493, %v2824_v1   ;;  %72 = vperm.xlu0 %2492, %v2829_v2   ;;  %v2841_v4 = vld [vmem:[%s4258_s2 + $0x8] sm:$0xff]  ;;  %v2853_v6 = vld [vmem:[%s4258_s2 + $0x20] sm:$0xff]  ;;  %v2860_v7 = vld [vmem:[%s4258_s2 + $0x38] sm:$0xff]  ;;  %v2983_v27 = vshrl.u32 %v150_v25, 7  ;;  %vm2147_vm1 = vcmask 130048   ;;  %vm2164_vm2 = vcmask 195584  }
   0x3   :  { %v2848_v5 = vld [vmem:[%s4258_s2 + $0x28] sm:$0xff]  ;;  %v2865_v8 = vld [vmem:[%s4258_s2 + $0x30] sm:$0xff]  ;;  %v2877_v10 = vld [vmem:[%s4258_s2 + $0x40] sm:$0xff]  ;;  %vm2220_vm3 = vcmask 261120  }
   0x4   :  { %v2872_v9 = vld [vmem:[%s4258_s2 + $0x48] sm:$0xff]  ;;  %v2884_v11 = vld [vmem:[%s4258_s2 + $0x58] sm:$0xff]  ;;  %v2889_v12 = vld [vmem:[%s4258_s2 + $0x50] sm:$0xff]  ;;  %4335 = vst [vmem:[#allocation3_spill] sm:$0xff] %v2983_v27  ;;  %v152_v29 = vsub.s32 0, %v2983_v27 }
   0x5   :  { %v2896_v13 = vld [vmem:[%s4258_s2 + $0x68] sm:$0xff]  ;;  %v2901_v14 = vld [vmem:[%s4258_s2 + $0x60] sm:$0xff]  ;;  %v2908_v15 = vld [vmem:[%s4258_s2 + $0x78] sm:$0xff] }
   0x6   :  { %87 = vperm.xlu1 %2493, %v2836_v3   ;;  %77 = vperm.xlu0 %2492, %v2841_v4   ;;  %v2913_v16 = vld [vmem:[%s4258_s2 + $0x70] sm:$0xff]  ;;  %v2936_v18 = vld [vmem:[%s4259_s0] sm:$0xff]   ;;  %v2941_v19 = vld [vmem:[%s4259_s0 + $0x8] sm:$0xff]  }
   0x7   :  { %4334 = vst [vmem:[#allocation2_spill] sm:$0xff] %v2913_v16  ;;  %2353 = vmatprep.subr.bf16.mxu0 %v2936_v18  ;;  %v2949_v20 = vld [vmem:[%s4259_s0 + $0x10] sm:$0xff]   ;;  %v2958_v22 = vld [vmem:[%s4259_s0 + $0x18] sm:$0xff]   ;;  %v2965_v23 = vld [vmem:[%s4259_s0 + $0x20] sm:$0xff]  }
   0x8   :  { %2354 = vmatpush3.bf16.msra.mxu0 %v2936_v18  ;;  %v2972_v24 = vld [vmem:[%s4259_s0 + $0x28] sm:$0xff]   ;;  %v2979_v26 = vld [vmem:[%s4259_s0 + $0x30] sm:$0xff]   ;;  %v2988_v28 = vld [vmem:[%s4259_s0 + $0x38] sm:$0xff]  }
   0x9   :  { %2355 = vmatprep.subr.bf16.mxu0 %v2941_v19  ;;  %v2996_v30 = vld [vmem:[%s4260_s1] sm:$0xf]  ;;  %v2282_v40 = vld [vmem:[%s4261_s4 + $0x8] sm:$0xff]   ;;  %v2283_v52 = vld [vmem:[%s4261_s4 + $0x10] sm:$0xff]  }
   0xa   :  { %97 = vperm.xlu1 %2493, %v2848_v5   ;;  %92 = vperm.xlu0 %2492, %v2853_v6   ;;  %4336 = vst [vmem:[#allocation4_spill] sm:$0xff] %v2996_v30  ;;  %v3000_v31 = vrot.slane %v2996_v30, %v152_v29  ;;  %v2251_v34 = vld [vmem:[%s4261_s4] sm:$0xff]   ;;  %v3016_v47 = vunpack.c.l.bf16 %v2282_v40  ;;  %v3027_v58 = vunpack.c.l.bf16 %v2283_v52  ;;  %v3029_v59 = vunpack.c.h.bf16 %v2282_v40 }
   0xb   :  { %v3007_v39 = vunpack.c.l.bf16 %v2251_v34  ;;  %v3014_v46 = vunpack.c.h.bf16 %v2251_v34 }
   0xc   :  { %2356 = vmatpush3.bf16.msra.mxu0 %v2941_v19  ;;  %4339 = vst [vmem:[#allocation7_spill] sm:$0xff] %v3016_v47  ;;  %4340 = vst [vmem:[#allocation8_spill] sm:$0xff] %v3027_v58 }
   0xd   :  { %2357 = vmatprep.subr.bf16.mxu0 %v2949_v20  ;;  %4337 = vst [vmem:[#allocation5_spill] sm:$0xff] %v3007_v39  ;;  %4338 = vst [vmem:[#allocation6_spill] sm:$0xff] %v3014_v46 }
   0xe   :  { %107 = vperm.xlu1 %2493, %v2860_v7   ;;  %102 = vperm.xlu0 %2492, %v2865_v8   ;;  %4341 = vst [vmem:[#allocation9_spill] sm:$0xff] %v3029_v59 }
  0x10   :  { %2358 = vmatpush3.bf16.msra.mxu0 %v2949_v20 }
  0x11   :  { %2359 = vmatprep.subr.bf16.mxu0 %v2958_v22 }
  0x12   :  { %117 = vperm.xlu1 %2493, %v2872_v9   ;;  %112 = vperm.xlu0 %2492, %v2877_v10  }
  0x14   :  { %2360 = vmatpush3.bf16.msra.mxu0 %v2958_v22 }
  0x15   :  { %2361 = vmatprep.subr.bf16.mxu0 %v2965_v23 }
  0x16   :  { %127 = vperm.xlu1 %2493, %v2884_v11   ;;  %122 = vperm.xlu0 %2492, %v2889_v12  }
  0x18   :  { %2362 = vmatpush3.bf16.msra.mxu0 %v2965_v23 }
  0x19   :  { %2363 = vmatprep.subr.bf16.mxu0 %v2972_v24 }
  0x1a   :  { %137 = vperm.xlu1 %2493, %v2896_v13   ;;  %132 = vperm.xlu0 %2492, %v2901_v14  }
  0x1c   :  { %2364 = vmatpush3.bf16.msra.mxu0 %v2972_v24 }
  0x1d   :  { %2365 = vmatprep.subr.bf16.mxu0 %v2979_v26 }
  0x1e   :  { %147 = vperm.xlu1 %2493, %v2908_v15   ;;  %142 = vperm.xlu0 %2492, %v2913_v16  }
  0x20   :  { %2366 = vmatpush3.bf16.msra.mxu0 %v2979_v26 }
  0x21   :  { %2367 = vmatprep.subr.bf16.mxu0 %v2988_v28 }
  0x22   :  { %2495 = vset.pattern.permute.xlu1 %v2781_v17  ;;  %2494 = vset.pattern.permute.xlu0 %v2781_v17  ;;  %v2284_v17 = vld [vmem:[%s4261_s4 + $0x18] sm:$0xff]  }
  0x23   :  { %584 = vperm.xlu1 %2495, %v2841_v4   ;;  %580 = vperm.xlu0 %2494, %v2829_v2  }
  0x24   :  { %2368 = vmatpush3.bf16.msra.mxu0 %v2988_v28 }
  0x27   :  { %588 = vperm.xlu1 %2495, %v2824_v1   ;;  %592 = vperm.xlu0 %2494, %v2836_v3  }
  0x2b   :  { %596 = vperm.xlu1 %2495, %v2853_v6   ;;  %600 = vperm.xlu0 %2494, %v2848_v5  }
  0x2f   :  { %604 = vperm.xlu1 %2495, %v2865_v8   ;;  %608 = vperm.xlu0 %2494, %v2860_v7  }
  0x33   :  { %612 = vperm.xlu1 %2495, %v2877_v10   ;;  %616 = vperm.xlu0 %2494, %v2872_v9  }
  0x37   :  { %620 = vperm.xlu1 %2495, %v2889_v12   ;;  %624 = vperm.xlu0 %2494, %v2884_v11  }
  0x3b   :  { %628 = vperm.xlu1 %2495, %v2901_v14   ;;  %632 = vperm.xlu0 %2494, %v2896_v13  }
  0x3f   :  { %636 = vperm.xlu1 %2495, %v2913_v16   ;;  %640 = vperm.xlu0 %2494, %v2908_v15  }
  0x43   :  { %2497 = vset.pattern.permute.xlu1 %v4264_v21  ;;  %2496 = vset.pattern.permute.xlu0 %v4264_v21 }
  0x81   :  { %v83_v32 = vpop.permute.xlu1 %82  ;;  %v73_v33 = vpop.permute.xlu0 %72 }
  0x82   :  { %v156_v35 = vadd.f32 %v3000_v31, %v83_v32  ;;  %v154_v36 = vadd.f32 %v3000_v31, %v73_v33 }
  0x84   :  { %v172_v37 = vmul.f32 0.2, %v156_v35  ;;  %v170_v38 = vmul.f32 0.2, %v154_v36 }
  0x85   :  { %v88_v41 = vpop.permute.xlu1 %87  ;;  %v78_v42 = vpop.permute.xlu0 %77 }
  0x86   :  { %v157_v43 = vadd.f32 %v3000_v31, %v88_v41  ;;  %v155_v44 = vadd.f32 %v3000_v31, %v78_v42  ;;  %v186_v45 = vmax.f32 %v154_v36, %v170_v38  ;;  %v188_v51 = vmax.f32 %v156_v35, %v172_v37 }
  0x87   :  { %v3047_v36 = vunpack.c.l.bf16 %v2284_v17  ;;  %v3049_v37 = vunpack.c.h.bf16 %v2283_v52 }
  0x88   :  { %v173_v48 = vmul.f32 0.2, %v157_v43  ;;  %v171_v49 = vmul.f32 0.2, %v155_v44  ;;  %v3019_v50 = vadd.f32 %v3007_v39, %v186_v45  ;;  %v3035_v0 = vadd.f32 %v3016_v47, %v188_v51 }
  0x89   :  { %v98_v53 = vpop.permute.xlu1 %97  ;;  %v93_v54 = vpop.permute.xlu0 %92  ;;  %4342 = vst [vmem:[#allocation10_spill] sm:$0xff] %v3047_v36  ;;  %4343 = vst [vmem:[#allocation11_spill] sm:$0xff] %v3049_v37 }
  0x8a   :  { %v159_v55 = vadd.f32 %v3000_v31, %v98_v53  ;;  %v158_v56 = vadd.f32 %v3000_v31, %v93_v54  ;;  %218 = vmax.xlane.f32.xlu0 %v3019_v50  ;;  %v187_v57 = vmax.f32 %v155_v44, %v171_v49  ;;  %v189_v60 = vmax.f32 %v157_v43, %v173_v48  ;;  %v2285_v43 = vld [vmem:[%s4261_s4 + $0x20] sm:$0xff]  }
  0x8b   :  { %v3061_v52 = vunpack.c.l.bf16 %v2285_v43  ;;  %v3063_v53 = vunpack.c.h.bf16 %v2284_v17 }
  0x8c   :  { %v175_v61 = vmul.f32 0.2, %v159_v55  ;;  %v174_v62 = vmul.f32 0.2, %v158_v56  ;;  %v3032_v63 = vadd.f32 %v3014_v46, %v187_v57  ;;  %v3045_v35 = vadd.f32 %v3029_v59, %v189_v60 }
  0x8d   :  { %v108_v25 = vpop.permute.xlu1 %107  ;;  %v103_v29 = vpop.permute.xlu0 %102  ;;  %4344 = vst [vmem:[#allocation12_spill] sm:$0xff] %v3063_v53 }
  0x8e   :  { %v161_v32 = vadd.f32 %v3000_v31, %v108_v25  ;;  %v160_v33 = vadd.f32 %v3000_v31, %v103_v29  ;;  %220 = vmax.xlane.f32.xlu1 %v3032_v63  ;;  %222 = vmax.xlane.f32.xlu0 %v3035_v0  ;;  %v190_v34 = vmax.f32 %v158_v56, %v174_v62 }
  0x8f   :  { %v191_v42 = vmax.f32 %v159_v55, %v175_v61  ;;  %v2286_v61 = vld [vmem:[%s4261_s4 + $0x28] sm:$0xff]  }
  0x90   :  { %v177_v38 = vmul.f32 0.2, %v161_v32  ;;  %v176_v40 = vmul.f32 0.2, %v160_v33  ;;  %v3052_v41 = vadd.f32 %v3027_v58, %v190_v34  ;;  %v3081_v34 = vunpack.c.l.bf16 %v2286_v61 }
  0x91   :  { %v118_v44 = vpop.permute.xlu1 %117  ;;  %v113_v45 = vpop.permute.xlu0 %112  ;;  %v3069_v60 = vadd.f32 %v3049_v37, %v191_v42 }
  0x92   :  { %v163_v48 = vadd.f32 %v3000_v31, %v118_v44  ;;  %v162_v49 = vadd.f32 %v3000_v31, %v113_v45  ;;  %226 = vmax.xlane.f32.xlu1 %v3052_v41  ;;  %224 = vmax.xlane.f32.xlu0 %v3045_v35  ;;  %v192_v51 = vmax.f32 %v160_v33, %v176_v40 }
  0x93   :  { %v193_v54 = vmax.f32 %v161_v32, %v177_v38  ;;  %4346 = vst [vmem:[#allocation14_spill] sm:$0xff] %v3069_v60  ;;  %v3083_v38 = vunpack.c.h.bf16 %v2285_v43 }
  0x94   :  { %v179_v55 = vmul.f32 0.2, %v163_v48  ;;  %v178_v56 = vmul.f32 0.2, %v162_v49  ;;  %v3066_v57 = vadd.f32 %v3047_v36, %v192_v51  ;;  %v2287_v51 = vld [vmem:[%s4261_s4 + $0x30] sm:$0xff]  }
  0x95   :  { %v128_v62 = vpop.permute.xlu1 %127  ;;  %v123_v25 = vpop.permute.xlu0 %122  ;;  %v3079_v33 = vadd.f32 %v3063_v53, %v193_v54  ;;  %4348 = vst [vmem:[#allocation16_spill] sm:$0xff] %v3083_v38 }
  0x96   :  { %4345 = vst [vmem:[#allocation13_spill] sm:$0xff] %v3066_v57  ;;  %v165_v29 = vadd.f32 %v3000_v31, %v128_v62  ;;  %v164_v17 = vadd.f32 %v3000_v31, %v123_v25  ;;  %230 = vmax.xlane.f32.xlu1 %v3066_v57  ;;  %228 = vmax.xlane.f32.xlu0 %v3069_v60 }
  0x97   :  { %v194_v32 = vmax.f32 %v162_v49, %v178_v56  ;;  %4347 = vst [vmem:[#allocation15_spill] sm:$0xff] %v3079_v33  ;;  %v195_v45 = vmax.f32 %v163_v48, %v179_v55  ;;  %v645_v56 = vsub.s32 1, %v2983_v27  ;;  %v3098_v48 = vunpack.c.h.bf16 %v2286_v61 }
  0x98   :  { %v181_v40 = vmul.f32 0.2, %v165_v29  ;;  %v180_v42 = vmul.f32 0.2, %v164_v17 }
  0x99   :  { %v3086_v44 = vadd.f32 %v3061_v52, %v194_v32  ;;  %v138_v62 = vpop.permute.xlu1 %137  ;;  %v133_v25 = vpop.permute.xlu0 %132  ;;  %v3096_v32 = vunpack.c.l.bf16 %v2287_v51  ;;  %4350 = vst [vmem:[#allocation18_spill] sm:$0xff] %v3098_v48 }
  0x9a   :  { %v167_v49 = vadd.f32 %v3000_v31, %v138_v62  ;;  %v166_v54 = vadd.f32 %v3000_v31, %v133_v25  ;;  %232 = vmax.xlane.f32.xlu0 %v3079_v33  ;;  %v196_v43 = vmax.f32 %v164_v17, %v180_v42  ;;  %v197_v55 = vmax.f32 %v165_v29, %v181_v40  ;;  %v2288_v25 = vld [vmem:[%s4261_s4 + $0x38] sm:$0xff]   ;;  %s2783_s4 = smov 119  }
  0x9b   :  { %4349 = vst [vmem:[#allocation17_spill] sm:$0xff] %v3086_v44  ;;  %234 = vmax.xlane.f32.xlu1 %v3086_v44  ;;  %v3104_v62 = vadd.f32 %v3083_v38, %v195_v45  ;;  %v3114_v40 = vrot.slane %v2996_v30, %v645_v56  ;;  %v3121_v33 = vunpack.c.h.bf16 %v2287_v51 }
  0x9c   :  { %v183_v21 = vmul.f32 0.2, %v167_v49  ;;  %v182_v16 = vmul.f32 0.2, %v166_v54  ;;  %v3101_v60 = vadd.f32 %v3081_v34, %v196_v43  ;;  %v3117_v45 = vadd.f32 %v3098_v48, %v197_v55 }
  0x9d   :  { %4352 = vst [vmem:[#allocation20_spill] sm:$0xff] %v3104_v62  ;;  %v148_v17 = vpop.permute.xlu1 %147  ;;  %v143_v42 = vpop.permute.xlu0 %142  ;;  %v3119_v43 = vunpack.c.l.bf16 %v2288_v25 }
  0x9e   :  { %4351 = vst [vmem:[#allocation19_spill] sm:$0xff] %v3101_v60  ;;  %v169_v27 = vadd.f32 %v3000_v31, %v148_v17  ;;  %v168_v61 = vadd.f32 %v3000_v31, %v143_v42  ;;  %236 = vmax.xlane.f32.xlu0 %v3104_v62  ;;  %v198_v29 = vmax.f32 %v166_v54, %v182_v16  ;;  %4353 = vst [vmem:[#allocation21_spill] sm:$0xff] %v3117_v45 }
  0x9f   :  { %238 = vmax.xlane.f32.xlu1 %v3101_v60  ;;  %v199_v31 = vmax.f32 %v167_v49, %v183_v21 }
  0xa0   :  { %v185_v44 = vmul.f32 0.2, %v169_v27  ;;  %v184_v57 = vmul.f32 0.2, %v168_v61  ;;  %v3124_v17 = vadd.f32 %v3096_v32, %v198_v29  ;;  %v3136_v29 = vunpack.c.h.bf16 %v2288_v25 }
  0xa1   :  { %v3134_v55 = vadd.f32 %v3121_v33, %v199_v31 }
  0xa2   :  { %4354 = vst [vmem:[#allocation22_spill] sm:$0xff] %v3124_v17  ;;  %v585_v42 = vpop.permute.xlu1 %584  ;;  %v581_v60 = vpop.permute.xlu0 %580  ;;  %240 = vmax.xlane.f32.xlu0 %v3117_v45  ;;  %v200_v16 = vmax.f32 %v168_v61, %v184_v57  ;;  %v201_v21 = vmax.f32 %v169_v27, %v185_v44 }
  0xa3   :  { %242 = vmax.xlane.f32.xlu1 %v3124_v17  ;;  %v648_v54 = vadd.f32 %v3114_v40, %v585_v42  ;;  %v647_v56 = vadd.f32 %v3114_v40, %v581_v60  ;;  %4355 = vst [vmem:[#allocation23_spill] sm:$0xff] %v3134_v55 }
  0xa4   :  { %v3131_v51 = vadd.f32 %v3119_v43, %v200_v16  ;;  %v3143_v42 = vadd.f32 %v3136_v29, %v201_v21 }
  0xa5   :  { %v664_v49 = vmul.f32 0.2, %v648_v54  ;;  %v663_v30 = vmul.f32 0.2, %v647_v56 }
  0xa6   :  { %v589_v62 = vpop.permute.xlu1 %588  ;;  %v593_v17 = vpop.permute.xlu0 %592  ;;  %244 = vmax.xlane.f32.xlu0 %v3134_v55 }
  0xa7   :  { %246 = vmax.xlane.f32.xlu1 %v3131_v51  ;;  %v649_v57 = vadd.f32 %v3114_v40, %v589_v62  ;;  %v650_v60 = vadd.f32 %v3114_v40, %v593_v17  ;;  %v679_v61 = vmax.f32 %v647_v56, %v663_v30  ;;  %v680_v31 = vmax.f32 %v648_v54, %v664_v49 }
  0xa9   :  { %v665_v25 = vmul.f32 0.2, %v649_v57  ;;  %v666_v16 = vmul.f32 0.2, %v650_v60  ;;  %v3146_v27 = vadd.f32 %v3007_v39, %v679_v61  ;;  %v3153_v17 = vadd.f32 %v3014_v46, %v680_v31 }
  0xaa   :  { %v597_v44 = vpop.permute.xlu1 %596  ;;  %v601_v45 = vpop.permute.xlu0 %600  ;;  %248 = vmax.xlane.f32.xlu0 %v3143_v42 }
  0xab   :  { %v651_v55 = vadd.f32 %v3114_v40, %v597_v44  ;;  %v652_v62 = vadd.f32 %v3114_v40, %v601_v45  ;;  %711 = vmax.xlane.f32.xlu1 %v3146_v27  ;;  %v682_v30 = vmax.f32 %v650_v60, %v666_v16  ;;  %v681_v54 = vmax.f32 %v649_v57, %v665_v25 }
  0xad   :  { %v667_v56 = vmul.f32 0.2, %v651_v55  ;;  %v668_v21 = vmul.f32 0.2, %v652_v62  ;;  %v3156_v49 = vadd.f32 %v3029_v59, %v682_v30  ;;  %v3163_v31 = vadd.f32 %v3016_v47, %v681_v54 }
  0xae   :  { %v605_v61 = vpop.permute.xlu1 %604  ;;  %v609_v39 = vpop.permute.xlu0 %608  ;;  %713 = vmax.xlane.f32.xlu0 %v3153_v17 }
  0xaf   :  { %v653_v44 = vadd.f32 %v3114_v40, %v605_v61  ;;  %v654_v45 = vadd.f32 %v3114_v40, %v609_v39  ;;  %717 = vmax.xlane.f32.xlu1 %v3156_v49  ;;  %v684_v60 = vmax.f32 %v652_v62, %v668_v21  ;;  %v683_v57 = vmax.f32 %v651_v55, %v667_v56 }
  0xb1   :  { %v669_v25 = vmul.f32 0.2, %v653_v44  ;;  %v670_v16 = vmul.f32 0.2, %v654_v45  ;;  %v3166_v30 = vadd.f32 %v3049_v37, %v684_v60  ;;  %v3173_v54 = vadd.f32 %v3027_v58, %v683_v57 }
  0xb2   :  { %v613_v59 = vpop.permute.xlu1 %612  ;;  %v617_v46 = vpop.permute.xlu0 %616  ;;  %715 = vmax.xlane.f32.xlu0 %v3163_v31 }
  0xb3   :  { %v655_v61 = vadd.f32 %v3114_v40, %v613_v59  ;;  %v656_v39 = vadd.f32 %v3114_v40, %v617_v46  ;;  %721 = vmax.xlane.f32.xlu1 %v3166_v30  ;;  %v686_v62 = vmax.f32 %v654_v45, %v670_v16  ;;  %v685_v55 = vmax.f32 %v653_v44, %v669_v25 }
  0xb5   :  { %v671_v56 = vmul.f32 0.2, %v655_v61  ;;  %v672_v21 = vmul.f32 0.2, %v656_v39  ;;  %v3176_v60 = vadd.f32 %v3063_v53, %v686_v62  ;;  %v3183_v57 = vadd.f32 %v3047_v36, %v685_v55 }
  0xb6   :  { %v621_v37 = vpop.permute.xlu1 %620  ;;  %v625_v47 = vpop.permute.xlu0 %624  ;;  %719 = vmax.xlane.f32.xlu0 %v3173_v54 }
  0xb7   :  { %v657_v59 = vadd.f32 %v3114_v40, %v621_v37  ;;  %v658_v46 = vadd.f32 %v3114_v40, %v625_v47  ;;  %725 = vmax.xlane.f32.xlu1 %v3176_v60  ;;  %v688_v45 = vmax.f32 %v656_v39, %v672_v21  ;;  %v687_v44 = vmax.f32 %v655_v61, %v671_v56 }
  0xb9   :  { %v673_v25 = vmul.f32 0.2, %v657_v59  ;;  %v674_v16 = vmul.f32 0.2, %v658_v46  ;;  %v3186_v62 = vadd.f32 %v3083_v38, %v688_v45  ;;  %v3193_v55 = vadd.f32 %v3061_v52, %v687_v44 }
  0xba   :  { %v629_v53 = vpop.permute.xlu1 %628  ;;  %v633_v58 = vpop.permute.xlu0 %632  ;;  %723 = vmax.xlane.f32.xlu0 %v3183_v57 }
  0xbb   :  { %v659_v37 = vadd.f32 %v3114_v40, %v629_v53  ;;  %v660_v47 = vadd.f32 %v3114_v40, %v633_v58  ;;  %729 = vmax.xlane.f32.xlu1 %v3186_v62  ;;  %v690_v39 = vmax.f32 %v658_v46, %v674_v16  ;;  %v689_v61 = vmax.f32 %v657_v59, %v673_v25 }
  0xbd   :  { %v675_v56 = vmul.f32 0.2, %v659_v37  ;;  %v676_v21 = vmul.f32 0.2, %v660_v47  ;;  %v3196_v45 = vadd.f32 %v3098_v48, %v690_v39  ;;  %v3203_v44 = vadd.f32 %v3081_v34, %v689_v61 }
  0xbe   :  { %v637_v38 = vpop.permute.xlu1 %636  ;;  %v641_v36 = vpop.permute.xlu0 %640  ;;  %727 = vmax.xlane.f32.xlu0 %v3193_v55 }
  0xbf   :  { %v661_v53 = vadd.f32 %v3114_v40, %v637_v38  ;;  %v662_v58 = vadd.f32 %v3114_v40, %v641_v36  ;;  %733 = vmax.xlane.f32.xlu1 %v3196_v45  ;;  %v692_v46 = vmax.f32 %v660_v47, %v676_v21  ;;  %v691_v59 = vmax.f32 %v659_v37, %v675_v56 }
  0xc1   :  { %v677_v25 = vmul.f32 0.2, %v661_v53  ;;  %v678_v16 = vmul.f32 0.2, %v662_v58  ;;  %v3206_v39 = vadd.f32 %v3121_v33, %v692_v46  ;;  %v3211_v38 = vadd.f32 %v3096_v32, %v691_v59 }
  0xc2   :  { %731 = vmax.xlane.f32.xlu0 %v3203_v44 }
  0xc3   :  { %737 = vmax.xlane.f32.xlu1 %v3206_v39  ;;  %v694_v48 = vmax.f32 %v662_v58, %v678_v16  ;;  %v693_v36 = vmax.f32 %v661_v53, %v677_v25 }
  0xc5   :  { %v3214_v40 = vadd.f32 %v3136_v29, %v694_v48  ;;  %v3219_v37 = vadd.f32 %v3119_v43, %v693_v36 }
  0xc6   :  { %735 = vmax.xlane.f32.xlu0 %v3211_v38 }
  0xc7   :  { %741 = vmax.xlane.f32.xlu1 %v3214_v40 }
  0xca   :  { %739 = vmax.xlane.f32.xlu0 %v3219_v37 }
  0xd8   :  { %801 = vrot.lane.b32.xlu1 %v2941_v19, %s2783_s4  ;;  %v2784_v19 = vmov 3  }
  0xdc   :  { %803 = vrot.lane.b32.xlu1 %v2949_v20, %s2783_s4 }
  0xe0   :  { %799 = vrot.lane.b32.xlu0 %v2936_v18, %s2783_s4  ;;  %807 = vrot.lane.b32.xlu1 %v2965_v23, %s2783_s4  ;;  %v4356_v18 = vmov 2  }
  0xe4   :  { %805 = vrot.lane.b32.xlu0 %v2958_v22, %s2783_s4  ;;  %811 = vrot.lane.b32.xlu1 %v2979_v26, %s2783_s4 }
  0xe8   :  { %809 = vrot.lane.b32.xlu0 %v2972_v24, %s2783_s4  ;;  %1037 = vperm.xlu1 %2497, %v2841_v4  }
  0xec   :  { %813 = vrot.lane.b32.xlu0 %v2988_v28, %s2783_s4  ;;  %1041 = vperm.xlu1 %2497, %v2824_v1  }
  0xf0   :  { %1033 = vperm.xlu0 %2496, %v2829_v2   ;;  %2498 = vset.pattern.permute.xlu1 %v2784_v19 }
  0xf1   :  { %1486 = vperm.xlu1 %2498, %v2829_v2  }
  0xf4   :  { %1045 = vperm.xlu0 %2496, %v2836_v3  }
  0xf5   :  { %1494 = vperm.xlu1 %2498, %v2824_v1  }
  0xf8   :  { %1049 = vperm.xlu0 %2496, %v2853_v6  }
  0xf9   :  { %1498 = vperm.xlu1 %2498, %v2836_v3  }
  0xfc   :  { %1061 = vperm.xlu0 %2496, %v2860_v7  }
  0xfd   :  { %2499 = vset.pattern.permute.xlu1 %v4356_v18 }
  0xfe   :  { %1053 = vperm.xlu1 %2499, %v2848_v5  }
 0x100   :  { %1065 = vperm.xlu0 %2496, %v2877_v10  }
 0x102   :  { %1057 = vperm.xlu1 %2499, %v2865_v8  }
 0x104   :  { %1077 = vperm.xlu0 %2496, %v2884_v11  }
 0x106   :  { %2500 = vset.pattern.permute.xlu1 %v2784_v19 }
 0x107   :  { %1502 = vperm.xlu1 %2500, %v2853_v6  }
 0x108   :  { %1081 = vperm.xlu0 %2496, %v2901_v14  }
 0x10b   :  { %1510 = vperm.xlu1 %2500, %v2865_v8  }
 0x10c   :  { %1093 = vperm.xlu0 %2496, %v2908_v15  }
 0x10f   :  { %1514 = vperm.xlu1 %2500, %v2860_v7  }
 0x110   :  { %2504 = vset.pattern.permute.xlu0 %v2784_v19 }
 0x111   :  { %1490 = vperm.xlu0 %2504, %v2841_v4  }
 0x113   :  { %2501 = vset.pattern.permute.xlu1 %v4356_v18 }
 0x114   :  { %1069 = vperm.xlu1 %2501, %v2872_v9  }
 0x115   :  { %1506 = vperm.xlu0 %2504, %v2848_v5  }
 0x117   :  { %v219_v1 = vpop.xlane.xlu0 %218 }
 0x118   :  { %v250_v2 = vsub.f32 %v3019_v50, %v219_v1  ;;  %1073 = vperm.xlu1 %2501, %v2889_v12  }
 0x119   :  { %1522 = vperm.xlu0 %2504, %v2872_v9  }
 0x11a   :  { %v266_v3 = vmul.f32 1.442695, %v250_v2  ;;  %v4361_v2 = vld [vmem:[#allocation19_spill] sm:$0xff] }
 0x11b   :  { %v221_v6 = vpop.xlane.xlu1 %220  ;;  %v223_v7 = vpop.xlane.xlu0 %222 }
 0x11c   :  { %v251_v8 = vsub.f32 %v3032_v63, %v221_v6  ;;  %v252_v4 = vsub.f32 %v3035_v0, %v223_v7  ;;  %2502 = vset.pattern.permute.xlu1 %v2784_v19  ;;  %2516 = vpow2.f32 %v266_v3  ;;  %v4357_v0 = vld [vmem:[#allocation13_spill] sm:$0xff]  ;;  %v4362_v6 = vld [vmem:[#allocation20_spill] sm:$0xff] }
 0x11d   :  { %1538 = vperm.xlu0 %2504, %v2896_v13   ;;  %1518 = vperm.xlu1 %2502, %v2877_v10   ;;  %v4358_v10 = vld [vmem:[#allocation14_spill] sm:$0xff] }
 0x11e   :  { %v268_v5 = vmul.f32 1.442695, %v251_v8  ;;  %v270_v23 = vmul.f32 1.442695, %v252_v4 }
 0x11f   :  { %v227_v20 = vpop.xlane.xlu1 %226  ;;  %v225_v22 = vpop.xlane.xlu0 %224 }
 0x120   :  { %2518 = vpow2.f32 %v268_v5  ;;  %v254_v9 = vsub.f32 %v3052_v41, %v227_v20  ;;  %v253_v24 = vsub.f32 %v3045_v35, %v225_v22  ;;  %v4359_v35 = vld [vmem:[#allocation17_spill] sm:$0xff]  ;;  %v4363_v5 = vld [vmem:[#allocation2_spill] sm:$0xff] }
 0x121   :  { %1526 = vperm.xlu1 %2502, %v2889_v12   ;;  %2520 = vpow2.f32 %v270_v23  ;;  %v4360_v12 = vld [vmem:[#allocation15_spill] sm:$0xff] }
 0x122   :  { %v272_v26 = vmul.f32 1.442695, %v253_v24  ;;  %v274_v63 = vmul.f32 1.442695, %v254_v9  ;;  %v4365_v24 = vld [vmem:[#allocation21_spill] sm:$0xff] }
 0x123   :  { %v231_v28 = vpop.xlane.xlu1 %230  ;;  %v229_v50 = vpop.xlane.xlu0 %228 }
 0x124   :  { %v256_v48 = vsub.f32 %v4357_v0, %v231_v28  ;;  %v255_v47 = vsub.f32 %v4358_v10, %v229_v50  ;;  %2522 = vpow2.f32 %v272_v26 }
 0x125   :  { %1530 = vperm.xlu1 %2502, %v2884_v11   ;;  %2524 = vpow2.f32 %v274_v63 }
 0x126   :  { %v276_v61 = vmul.f32 1.442695, %v255_v47  ;;  %v278_v41 = vmul.f32 1.442695, %v256_v48  ;;  %v2517_v46 = vpop.eup %2516 }
 0x127   :  { %v233_v21 = vpop.xlane.xlu0 %232 }
 0x128   :  { %v235_v56 = vpop.xlane.xlu1 %234  ;;  %v257_v58 = vsub.f32 %v4360_v12, %v233_v21  ;;  %2526 = vpow2.f32 %v276_v61 }
 0x129   :  { %v258_v53 = vsub.f32 %v4359_v35, %v235_v56  ;;  %2503 = vset.pattern.permute.xlu1 %v4356_v18  ;;  %2528 = vpow2.f32 %v278_v41  ;;  %v4366_v56 = vld [vmem:[#allocation23_spill] sm:$0xff] }
 0x12a   :  { %v2519_v59 = vpop.eup %2518  ;;  %v280_v25 = vmul.f32 1.442695, %v257_v58  ;;  %1085 = vperm.xlu1 %2503, %v2896_v13   ;;  %v4364_v13 = vld [vmem:[#allocation22_spill] sm:$0xff] }
 0x12b   :  { %v237_v36 = vpop.xlane.xlu0 %236  ;;  %v314_v11 = vpack.c.bf16 %v2519_v59, %v2517_v46  ;;  %v282_v1 = vmul.f32 1.442695, %v258_v53  ;;  %v2521_v8 = vpop.eup %2520 }
 0x12c   :  { %v239_v16 = vpop.xlane.xlu1 %238  ;;  %v259_v7 = vsub.f32 %v4362_v6, %v237_v36  ;;  %2530 = vpow2.f32 %v280_v25 }
 0x12d   :  { %v260_v3 = vsub.f32 %v4361_v2, %v239_v16  ;;  %2369 = vmatprep.mubr.bf16.mxu0 %v314_v11  ;;  %2532 = vpow2.f32 %v282_v1 }
 0x12e   :  { %v284_v4 = vmul.f32 1.442695, %v259_v7  ;;  %1089 = vperm.xlu1 %2503, %v4363_v5   ;;  %v2523_v18 = vpop.eup %2522 }
 0x12f   :  { %v286_v20 = vmul.f32 1.442695, %v260_v3  ;;  %v241_v23 = vpop.xlane.xlu0 %240  ;;  %v315_v28 = vpack.c.bf16 %v2523_v18, %v2521_v8  ;;  %v2525_v50 = vpop.eup %2524 }
 0x130   :  { %v243_v22 = vpop.xlane.xlu1 %242  ;;  %v261_v26 = vsub.f32 %v4365_v24, %v241_v23  ;;  %2534 = vpow2.f32 %v284_v4 }
 0x131   :  { %v262_v9 = vsub.f32 %v4364_v13, %v243_v22  ;;  %2370 = vmatmul.mubr.bf16.vlgmr.msra.gmra.mrb[0].mxu0 %v315_v28  ;;  %2536 = vpow2.f32 %v286_v20 }
 0x132   :  { %v288_v63 = vmul.f32 1.442695, %v261_v26  ;;  %2505 = vset.pattern.permute.xlu1 %v2784_v19  ;;  %v2527_v0 = vpop.eup %2526 }
 0x133   :  { %v245_v10 = vpop.xlane.xlu0 %244  ;;  %1534 = vperm.xlu1 %2505, %v2901_v14   ;;  %v290_v47 = vmul.f32 1.442695, %v262_v9  ;;  %v316_v41 = vpack.c.bf16 %v2527_v0, %v2525_v50  ;;  %v2529_v35 = vpop.eup %2528 }
 0x134   :  { %v247_v48 = vpop.xlane.xlu1 %246  ;;  %v263_v21 = vsub.f32 %v4366_v56, %v245_v10  ;;  %2538 = vpow2.f32 %v288_v63 }
 0x135   :  { %v264_v61 = vsub.f32 %v3131_v51, %v247_v48  ;;  %2373 = vmatprep.mubr.bf16.mxu0 %v316_v41  ;;  %2540 = vpow2.f32 %v290_v47 }
 0x136   :  { %v292_v53 = vmul.f32 1.442695, %v263_v21  ;;  %v2531_v12 = vpop.eup %2530 }
 0x137   :  { %v294_v58 = vmul.f32 1.442695, %v264_v61  ;;  %v249_v46 = vpop.xlane.xlu0 %248  ;;  %1542 = vperm.xlu1 %2505, %v4363_v5   ;;  %v317_v14 = vpack.c.bf16 %v2531_v12, %v2529_v35  ;;  %v2533_v25 = vpop.eup %2532 }
 0x138   :  { %v265_v19 = vsub.f32 %v3143_v42, %v249_v46  ;;  %v712_v59 = vpop.xlane.xlu1 %711  ;;  %2542 = vpow2.f32 %v292_v53  ;;  %v4367_v46 = vld [vmem:[#allocation3_spill] sm:$0xff] }
 0x139   :  { %v743_v51 = vsub.f32 %v3146_v27, %v712_v59  ;;  %2374 = vmatmul.mubr.bf16.gmra.mrb[4].mxu0 %v317_v14  ;;  %2544 = vpow2.f32 %v294_v58 }
 0x13a   :  { %v296_v16 = vmul.f32 1.442695, %v265_v19  ;;  %v2535_v36 = vpop.eup %2534  ;;  %v1098_v19 = vsub.s32 2, %v4367_v46 }
 0x13b   :  { %v759_v11 = vmul.f32 1.442695, %v743_v51  ;;  %v714_v1 = vpop.xlane.xlu0 %713  ;;  %1546 = vperm.xlu1 %2505, %v2908_v15   ;;  %v318_v6 = vpack.c.bf16 %v2535_v36, %v2533_v25  ;;  %v2537_v42 = vpop.eup %2536  ;;  %v4368_v25 = vld [vmem:[#allocation4_spill] sm:$0xff] }
 0x13c   :  { %2546 = vpow2.f32 %v296_v16  ;;  %v744_v2 = vsub.f32 %v3153_v17, %v714_v1  ;;  %v718_v3 = vpop.xlane.xlu1 %717  ;;  %v3311_v16 = vrot.slane %v4368_v25, %v1098_v19 }
 0x13d   :  { %2377 = vmatprep.mubr.bf16.mxu0 %v318_v6  ;;  %2548 = vpow2.f32 %v759_v11  ;;  %v746_v11 = vsub.f32 %v3156_v49, %v718_v3  ;;  %v1551_v6 = vsub.s32 3, %v4367_v46 }
 0x13e   :  { %v761_v7 = vmul.f32 1.442695, %v744_v2  ;;  %v2539_v8 = vpop.eup %2538 }
 0x13f   :  { %v716_v27 = vpop.xlane.xlu0 %715  ;;  %v319_v5 = vpack.c.bf16 %v2539_v8, %v2537_v42  ;;  %v2541_v18 = vpop.eup %2540  ;;  %v765_v8 = vmul.f32 1.442695, %v746_v11 }
 0x140   :  { %2550 = vpow2.f32 %v761_v7  ;;  %v722_v4 = vpop.xlane.xlu1 %721  ;;  %v745_v14 = vsub.f32 %v3163_v31, %v716_v27 }
 0x141   :  { %2378 = vmatmul.mubr.bf16.gmra.mrb[8].mxu0 %v319_v5  ;;  %v748_v1 = vsub.f32 %v3166_v30, %v722_v4 }
 0x142   :  { %v2543_v20 = vpop.eup %2542  ;;  %v763_v42 = vmul.f32 1.442695, %v745_v14 }
 0x143   :  { %v720_v22 = vpop.xlane.xlu0 %719  ;;  %v320_v15 = vpack.c.bf16 %v2543_v20, %v2541_v18  ;;  %v2545_v13 = vpop.eup %2544  ;;  %v769_v18 = vmul.f32 1.442695, %v748_v1 }
 0x144   :  { %v3288_v23 = vpop.xlane.xlu1 %725  ;;  %v747_v36 = vsub.f32 %v3173_v54, %v720_v22  ;;  %v3319_v54 = vrot.slane %v4368_v25, %v1551_v6  ;;  %2552 = vpow2.f32 %v763_v42 }
 0x145   :  { %2381 = vmatprep.mubr.bf16.mxu0 %v320_v15  ;;  %v750_v22 = vsub.f32 %v3176_v60, %v3288_v23 }
 0x146   :  { %v2547_v17 = vpop.eup %2546  ;;  %v767_v31 = vmul.f32 1.442695, %v747_v36 }
 0x147   :  { %v3290_v9 = vpop.xlane.xlu0 %723  ;;  %v321_v24 = vpack.c.bf16 %v2547_v17, %v2545_v13  ;;  %v2549_v28 = vpop.eup %2548  ;;  %v4369_v17 = vld [vmem:[#allocation6_spill] sm:$0xff] }
 0x148   :  { %v3292_v26 = vpop.xlane.xlu1 %729  ;;  %v749_v49 = vsub.f32 %v3183_v57, %v3290_v9  ;;  %2554 = vpow2.f32 %v767_v31  ;;  %v4372_v31 = vld [vmem:[#allocation9_spill] sm:$0xff] }
 0x149   :  { %2382 = vmatmul.mubr.bf16.gmra.mrb[12].mxu0 %v321_v24  ;;  %2556 = vpow2.f32 %v765_v8  ;;  %v752_v57 = vsub.f32 %v3186_v62, %v3292_v26 }
 0x14a   :  { %v2551_v50 = vpop.eup %2550  ;;  %2558 = vpow2.f32 %v769_v18 }
 0x14b   :  { %v3294_v63 = vpop.xlane.xlu0 %727  ;;  %v791_v0 = vpack.c.bf16 %v2551_v50, %v2549_v28  ;;  %v771_v50 = vmul.f32 1.442695, %v749_v49 }
 0x14c   :  { %v3296_v48 = vpop.xlane.xlu1 %733  ;;  %v751_v4 = vsub.f32 %v3193_v55, %v3294_v63  ;;  %v773_v63 = vmul.f32 1.442695, %v750_v22 }
 0x14d   :  { %2401 = vmatprep.mubr.bf16.mxu1 %v791_v0  ;;  %2560 = vpow2.f32 %v771_v50  ;;  %v754_v11 = vsub.f32 %v3196_v45, %v3296_v48 }
 0x14e   :  { %v775_v60 = vmul.f32 1.442695, %v751_v4  ;;  %v2553_v36 = vpop.eup %2552 }
 0x14f   :  { %v3298_v10 = vpop.xlane.xlu0 %731  ;;  %v781_v45 = vmul.f32 1.442695, %v754_v11 }
 0x150   :  { %v3300_v47 = vpop.xlane.xlu1 %737  ;;  %v753_v46 = vsub.f32 %v3203_v44, %v3298_v10  ;;  %2562 = vpow2.f32 %v775_v60 }
 0x151   :  { %2564 = vpow2.f32 %v773_v63  ;;  %v756_v10 = vsub.f32 %v3206_v39, %v3300_v47  ;;  %v2772_v63 = vld [vmem:[%s4259_s0] sm:$0xff]  }
 0x152   :  { %v2555_v44 = vpop.eup %2554 }
 0x153   :  { %v3302_v61 = vpop.xlane.xlu0 %735  ;;  %v785_v18 = vmul.f32 1.442695, %v756_v10 }
 0x154   :  { %v3304_v56 = vpop.xlane.xlu1 %741  ;;  %v755_v19 = vsub.f32 %v3211_v38, %v3302_v61  ;;  %v2557_v38 = vpop.eup %2556  ;;  %v779_v61 = vmul.f32 1.442695, %v753_v46 }
 0x155   :  { %v2559_v6 = vpop.eup %2558 }
 0x156   :  { %v783_v42 = vmul.f32 1.442695, %v755_v19 }
 0x157   :  { %v3306_v21 = vpop.xlane.xlu0 %739 }
 0x158   :  { %v802_v41 = vpop.permute.xlu1 %801  ;;  %v757_v47 = vsub.f32 %v3219_v37, %v3306_v21 }
 0x15a   :  { %v787_v4 = vmul.f32 1.442695, %v757_v47 }
 0x15b   :  { %v800_v35 = vpop.permute.xlu0 %799 }
 0x15c   :  { %v804_v53 = vpop.permute.xlu1 %803  ;;  %2385 = vmatprep.subr.bf16.mxu1 %v800_v35 }
 0x15d   :  { %2386 = vmatpush3.bf16.msra.mxu1 %v800_v35  ;;  %v4370_v35 = vld [vmem:[#allocation7_spill] sm:$0xff] }
 0x15e   :  { %2387 = vmatprep.subr.bf16.mxu1 %v802_v41 }
 0x15f   :  { %v806_v12 = vpop.permute.xlu0 %805 }
 0x160   :  { %v808_v58 = vpop.permute.xlu1 %807 }
 0x161   :  { %2388 = vmatpush3.bf16.msra.mxu1 %v802_v41 }
 0x162   :  { %2389 = vmatprep.subr.bf16.mxu1 %v804_v53 }
 0x163   :  { %v810_v51 = vpop.permute.xlu0 %809 }
 0x164   :  { %v812_v59 = vpop.permute.xlu1 %811 }
 0x165   :  { %2390 = vmatpush3.bf16.msra.mxu1 %v804_v53 }
 0x166   :  { %2391 = vmatprep.subr.bf16.mxu1 %v806_v12 }
 0x167   :  { %v814_v27 = vpop.permute.xlu0 %813 }
 0x168   :  { %v1038_v2 = vpop.permute.xlu1 %1037 }
 0x169   :  { %v1101_v7 = vadd.f32 %v3311_v16, %v1038_v2  ;;  %2392 = vmatpush3.bf16.msra.mxu1 %v806_v12  ;;  %v777_v12 = vmul.f32 1.442695, %v752_v57 }
 0x16a   :  { %2393 = vmatprep.subr.bf16.mxu1 %v808_v58 }
 0x16b   :  { %v1117_v5 = vmul.f32 0.2, %v1101_v7  ;;  %2566 = vpow2.f32 %v777_v12 }
 0x16c   :  { %v1042_v20 = vpop.permute.xlu1 %1041  ;;  %2568 = vpow2.f32 %v779_v61 }
 0x16d   :  { %v1133_v30 = vmax.f32 %v1101_v7, %v1117_v5  ;;  %v1102_v3 = vadd.f32 %v3311_v16, %v1042_v20  ;;  %2394 = vmatpush3.bf16.msra.mxu1 %v808_v58  ;;  %v792_v7 = vpack.c.bf16 %v2557_v38, %v2553_v36  ;;  %v793_v5 = vpack.c.bf16 %v2559_v6, %v2555_v44 }
 0x16e   :  { %2395 = vmatprep.subr.bf16.mxu1 %v810_v51  ;;  %2570 = vpow2.f32 %v783_v42  ;;  %v758_v20 = vsub.f32 %v3214_v40, %v3304_v56 }
 0x16f   :  { %v1118_v15 = vmul.f32 0.2, %v1102_v3  ;;  %v1034_v13 = vpop.permute.xlu0 %1033  ;;  %v3329_v24 = vadd.f32 %v4369_v17, %v1133_v30  ;;  %2572 = vpow2.f32 %v781_v45  ;;  %v4375_v45 = vld [vmem:[#allocation11_spill] sm:$0xff] }
 0x170   :  { %v1100_v9 = vadd.f32 %v3311_v16, %v1034_v13  ;;  %v1487_v28 = vpop.permute.xlu1 %1486  ;;  %2574 = vpow2.f32 %v785_v18  ;;  %v789_v13 = vmul.f32 1.442695, %v758_v20 }
 0x171   :  { %v1134_v0 = vmax.f32 %v1102_v3, %v1118_v15  ;;  %1166 = vmax.xlane.f32.xlu1 %v3329_v24  ;;  %2396 = vmatpush3.bf16.msra.mxu1 %v810_v51  ;;  %v1553_v55 = vadd.f32 %v3319_v54, %v1487_v28  ;;  %v4371_v51 = vld [vmem:[#allocation5_spill] sm:$0xff]  ;;  %2576 = vpow2.f32 %v787_v4 }
 0x172   :  { %v1116_v23 = vmul.f32 0.2, %v1100_v9  ;;  %2397 = vmatprep.subr.bf16.mxu1 %v812_v59  ;;  %2578 = vpow2.f32 %v789_v13 }
 0x173   :  { %v1046_v41 = vpop.permute.xlu0 %1045  ;;  %v3337_v53 = vadd.f32 %v4370_v35, %v1134_v0  ;;  %v1569_v58 = vmul.f32 0.2, %v1553_v55 }
 0x174   :  { %v1132_v62 = vmax.f32 %v1100_v9, %v1116_v23  ;;  %v1103_v26 = vadd.f32 %v3311_v16, %v1046_v41  ;;  %v1495_v0 = vpop.permute.xlu1 %1494 }
 0x175   :  { %1168 = vmax.xlane.f32.xlu1 %v3337_v53  ;;  %2398 = vmatpush3.bf16.msra.mxu1 %v812_v59  ;;  %v1585_v2 = vmax.f32 %v1553_v55, %v1569_v58  ;;  %v1555_v23 = vadd.f32 %v3319_v54, %v1495_v0 }
 0x176   :  { %v1119_v14 = vmul.f32 0.2, %v1103_v26  ;;  %2399 = vmatprep.subr.bf16.mxu1 %v814_v27  ;;  %v3346_v25 = vadd.f32 %v4371_v51, %v1132_v62 }
 0x177   :  { %v3350_v1 = vpop.permute.xlu0 %1049  ;;  %v3362_v39 = vadd.f32 %v4371_v51, %v1585_v2  ;;  %v1571_v58 = vmul.f32 0.2, %v1555_v23 }
 0x178   :  { %v1135_v59 = vmax.f32 %v1103_v26, %v1119_v14  ;;  %1164 = vmax.xlane.f32.xlu0 %v3346_v25  ;;  %v1499_v44 = vpop.permute.xlu1 %1498 }
 0x179   :  { %2400 = vmatpush3.bf16.msra.mxu1 %v814_v27  ;;  %v2561_v27 = vpop.eup %2560  ;;  %v1587_v51 = vmax.f32 %v1555_v23, %v1571_v58  ;;  %v1556_v10 = vadd.f32 %v3319_v54, %v1499_v44  ;;  %v4378_v23 = vld [vmem:[#allocation12_spill] sm:$0xff] }
 0x17a   :  { %v3356_v8 = vadd.f32 %v4372_v31, %v1135_v59  ;;  %v2563_v30 = vpop.eup %2562 }
 0x17b   :  { %v3358_v48 = vpop.permute.xlu0 %1061  ;;  %v2565_v3 = vpop.eup %2564  ;;  %v3389_v11 = vadd.f32 %v4370_v35, %v1587_v51  ;;  %v1572_v2 = vmul.f32 0.2, %v1556_v10 }
 0x17c   :  { %2402 = vmatmul.mubr.bf16.vlgmr.msra.gmra.mrb[0].mxu1 %v792_v7  ;;  %1170 = vmax.xlane.f32.xlu1 %v3356_v8  ;;  %v2567_v22 = vpop.eup %2566  ;;  %v794_v15 = vpack.c.bf16 %v2565_v3, %v2561_v27  ;;  %v1107_v4 = vadd.f32 %v3311_v16, %v3358_v48 }
 0x17d   :  { %2405 = vmatprep.mubr.bf16.mxu1 %v793_v5  ;;  %v795_v37 = vpack.c.bf16 %v2567_v22, %v2563_v30  ;;  %v2569_v21 = vpop.eup %2568  ;;  %4373 = vst [vmem:[#allocation13_spill] sm:$0xff] %v3389_v11  ;;  %v1054_v59 = vpop.permute.xlu1 %1053  ;;  %v1588_v61 = vmax.f32 %v1556_v10, %v1572_v2  ;;  %v1104_v30 = vadd.f32 %v3311_v16, %v3350_v1  ;;  %v4382_v2 = vld [vmem:[#allocation10_spill] sm:$0xff] }
 0x17e   :  { %v2571_v56 = vpop.eup %2570  ;;  %v1105_v38 = vadd.f32 %v3311_v16, %v1054_v59  ;;  %v1123_v13 = vmul.f32 0.2, %v1107_v4 }
 0x17f   :  { %v3368_v49 = vpop.permute.xlu0 %1065  ;;  %v2573_v9 = vpop.eup %2572  ;;  %v3399_v35 = vadd.f32 %v4372_v31, %v1588_v61  ;;  %v2774_v31 = vld [vmem:[%s4259_s0 + $0x10] sm:$0xff]   ;;  %v1120_v3 = vmul.f32 0.2, %v1104_v30 }
 0x180   :  { %1617 = vmax.xlane.f32.xlu1 %v3362_v39  ;;  %v2575_v28 = vpop.eup %2574  ;;  %v796_v50 = vpack.c.bf16 %v2573_v9, %v2569_v21  ;;  %v1121_v6 = vmul.f32 0.2, %v1105_v38  ;;  %v1139_v1 = vmax.f32 %v1107_v4, %v1123_v13 }
 0x181   :  { %v797_v60 = vpack.c.bf16 %v2575_v28, %v2571_v56  ;;  %v2577_v41 = vpop.eup %2576  ;;  %4374 = vst [vmem:[#allocation14_spill] sm:$0xff] %v3399_v35  ;;  %v1058_v7 = vpop.permute.xlu1 %1057 }
 0x182   :  { %v2579_v62 = vpop.eup %2578  ;;  %v1137_v42 = vmax.f32 %v1105_v38, %v1121_v6 }
 0x183   :  { %v3371_v57 = vpop.permute.xlu0 %1077  ;;  %v798_v46 = vpack.c.bf16 %v2579_v62, %v2577_v41  ;;  %v1106_v62 = vadd.f32 %v3311_v16, %v1058_v7 }
 0x184   :  { %2406 = vmatmul.mubr.bf16.gmra.mrb[4].mxu1 %v794_v15  ;;  %v3404_v5 = vadd.f32 %v4375_v45, %v1137_v42  ;;  %v1136_v15 = vmax.f32 %v1104_v30, %v1120_v3  ;;  %v2775_v3 = vld [vmem:[%s4259_s0 + $0x18] sm:$0xff]  }
 0x185   :  { %2409 = vmatprep.mubr.bf16.mxu1 %v795_v37 }
 0x186   :  { %4376 = vst [vmem:[#allocation17_spill] sm:$0xff] %v3404_v5  ;;  %v1503_v18 = vpop.permute.xlu1 %1502 }
 0x187   :  { %v3373_v40 = vpop.permute.xlu0 %1081  ;;  %v1557_v37 = vadd.f32 %v3319_v54, %v1503_v18 }
 0x189   :  { %v1573_v28 = vmul.f32 0.2, %v1557_v37 }
 0x18a   :  { %v1511_v47 = vpop.permute.xlu1 %1510 }
 0x18b   :  { %v3375_v55 = vpop.permute.xlu0 %1093  ;;  %v1589_v48 = vmax.f32 %v1557_v37, %v1573_v28 }
 0x18c   :  { %2410 = vmatmul.mubr.bf16.gmra.mrb[8].mxu1 %v796_v50  ;;  %v4377_v50 = vld [vmem:[#allocation8_spill] sm:$0xff] }
 0x18d   :  { %2413 = vmatprep.mubr.bf16.mxu1 %v797_v60  ;;  %v3424_v0 = vadd.f32 %v4377_v50, %v1136_v15 }
 0x18e   :  { %1252 = vrot.lane.b32.xlu0 %v2772_v63, %s2785_s8  ;;  %v1515_v27 = vpop.permute.xlu1 %1514 }
 0x190   :  { %v1491_v12 = vpop.permute.xlu0 %1490 }
 0x191   :  { %v1554_v26 = vadd.f32 %v3319_v54, %v1491_v12 }
 0x192   :  { %1705 = vrot.lane.b32.xlu0 %v2772_v63, %s2786_s9  ;;  %v3428_v63 = vadd.f32 %v4378_v23, %v1139_v1 }
 0x193   :  { %v1570_v19 = vmul.f32 0.2, %v1554_v26  ;;  %v3407_v20 = vpop.permute.xlu1 %1069 }
 0x194   :  { %2414 = vmatmul.mubr.bf16.gmra.mrb[12].mxu1 %v798_v46  ;;  %v1507_v56 = vpop.permute.xlu0 %1506  ;;  %4379 = vst [vmem:[#allocation15_spill] sm:$0xff] %v3428_v63  ;;  %v1122_v46 = vmul.f32 0.2, %v1106_v62 }
 0x195   :  { %v1586_v14 = vmax.f32 %v1554_v26, %v1570_v19  ;;  %v1558_v9 = vadd.f32 %v3319_v54, %v1507_v56  ;;  %v3435_v26 = vadd.f32 %v4377_v50, %v1589_v48  ;;  %v1560_v19 = vadd.f32 %v3319_v54, %v1515_v27 }
 0x196   :  { %v1138_v44 = vmax.f32 %v1106_v62, %v1122_v46 }
 0x197   :  { %v3385_v36 = vadd.f32 %v4369_v17, %v1586_v14  ;;  %v2773_v17 = vld [vmem:[%s4259_s0 + $0x8] sm:$0xff]   ;;  %v3417_v22 = vpop.permute.xlu1 %1073  ;;  %v1574_v60 = vmul.f32 0.2, %v1558_v9  ;;  %4380 = vst [vmem:[#allocation19_spill] sm:$0xff] %v3435_v26  ;;  %v1576_v10 = vmul.f32 0.2, %v1560_v19 }
 0x198   :  { %v3448_v38 = vadd.f32 %v4382_v2, %v1138_v44 }
 0x199   :  { %1619 = vmax.xlane.f32.xlu1 %v3385_v36  ;;  %v1590_v12 = vmax.f32 %v1558_v9, %v1574_v60  ;;  %v1592_v59 = vmax.f32 %v1560_v19, %v1576_v10 }
 0x19a   :  { %4383 = vst [vmem:[#allocation2_spill] sm:$0xff] %v3448_v38 }
 0x19b   :  { %v3442_v14 = vadd.f32 %v4375_v45, %v1590_v12  ;;  %v3454_v6 = vadd.f32 %v4378_v23, %v1592_v59  ;;  %v1523_v45 = vpop.permute.xlu0 %1522 }
 0x19c   :  { %v3420_v21 = vpop.permute.xlu1 %1518 }
 0x19d   :  { %1621 = vmax.xlane.f32.xlu1 %v3389_v11  ;;  %4381 = vst [vmem:[#allocation20_spill] sm:$0xff] %v3442_v14  ;;  %4384 = vst [vmem:[#allocation22_spill] sm:$0xff] %v3454_v6 }
 0x19f   :  { %v3464_v27 = vpop.permute.xlu0 %1538 }
 0x1a0   :  { %v3430_v41 = vpop.permute.xlu1 %1526 }
 0x1a4   :  { %v3438_v58 = vpop.permute.xlu1 %1530 }
 0x1a9   :  { %v3445_v51 = vpop.permute.xlu1 %1085 }
 0x1ad   :  { %v3450_v61 = vpop.permute.xlu1 %1089 }
 0x1ae   :  { %1254 = vrot.lane.b32.xlu1 %v2773_v17, %s2785_s8 }
 0x1b1   :  { %1623 = vmax.xlane.f32.xlu0 %v3399_v35 }
 0x1b2   :  { %1707 = vrot.lane.b32.xlu1 %v2773_v17, %s2786_s9  ;;  %v3457_v17 = vpop.permute.xlu1 %1534 }
 0x1b5   :  { %1174 = vmax.xlane.f32.xlu0 %v3404_v5 }
 0x1b6   :  { %v3460_v42 = vpop.permute.xlu1 %1542 }
 0x1ba   :  { %v3462_v7 = vpop.permute.xlu1 %1546 }
 0x1cb   :  { %1256 = vrot.lane.b32.xlu0 %v2774_v31, %s2785_s8 }
 0x1d6   :  { %1172 = vmax.xlane.f32.xlu1 %v3424_v0 }
 0x1da   :  { %1178 = vmax.xlane.f32.xlu1 %v3428_v63 }
 0x1de   :  { %1625 = vmax.xlane.f32.xlu1 %v3435_v26 }
 0x1e2   :  { %1627 = vmax.xlane.f32.xlu1 %v3442_v14  ;;  %v4403_v14 = vld [vmem:[#allocation18_spill] sm:$0xff] }
 0x1ea   :  { %1176 = vmax.xlane.f32.xlu0 %v3448_v38 }
 0x1ee   :  { %1631 = vmax.xlane.f32.xlu0 %v3454_v6 }
 0x1f3   :  { %1709 = vrot.lane.b32.xlu1 %v2774_v31, %s2786_s9 }
 0x1fe   :  { %v1167_v18 = vpop.xlane.xlu1 %1166 }
 0x1ff   :  { %v1197_v30 = vsub.f32 %v3329_v24, %v1167_v18  ;;  %v1559_v24 = vadd.f32 %v3319_v54, %v1511_v47 }
 0x201   :  { %v1214_v4 = vmul.f32 1.442695, %v1197_v30  ;;  %v1575_v50 = vmul.f32 0.2, %v1559_v24 }
 0x202   :  { %v3492_v59 = vpop.xlane.xlu1 %1168 }
 0x203   :  { %2580 = vpow2.f32 %v1214_v4  ;;  %v1591_v47 = vmax.f32 %v1559_v24, %v1575_v50  ;;  %v4398_v24 = vld [vmem:[#allocation16_spill] sm:$0xff]  ;;  %v1111_v50 = vadd.f32 %v3311_v16, %v3371_v57 }
 0x204   :  { %1258 = vrot.lane.b32.xlu0 %v2775_v3, %s2785_s8  ;;  %v3471_v15 = vpop.f32.mrb[0].mxu0 }
 0x205   :  { %4385 = vst [vmem:[#allocation21_spill] sm:$0xff] %v3471_v15  ;;  %v1165_v31 = vpop.xlane.xlu0 %1164  ;;  %v3474_v37 = vpop.f32.mrb[1].mxu0 }
 0x206   :  { %v1196_v13 = vsub.f32 %v3346_v25, %v1165_v31  ;;  %4386 = vst [vmem:[#allocation23_spill] sm:$0xff] %v3474_v37  ;;  %v3476_v56 = vpop.f32.mrb[2].mxu0  ;;  %v1109_v25 = vadd.f32 %v3311_v16, %v3407_v20  ;;  %v3497_v20 = vadd.f32 %v4382_v2, %v1591_v47 }
 0x207   :  { %4387 = vst [vmem:[#allocation3_spill] sm:$0xff] %v3476_v56  ;;  %v3478_v9 = vpop.f32.mrb[3].mxu0 }
 0x208   :  { %v1212_v1 = vmul.f32 1.442695, %v1196_v13  ;;  %4388 = vst [vmem:[#allocation4_spill] sm:$0xff] %v3478_v9  ;;  %1711 = vrot.lane.b32.xlu0 %v2775_v3, %s2786_s9  ;;  %v1125_v46 = vmul.f32 0.2, %v1109_v25  ;;  %4394 = vst [vmem:[#allocation8_spill] sm:$0xff] %v3497_v20  ;;  %v1108_v13 = vadd.f32 %v3311_v16, %v3368_v49 }
 0x209   :  { %v1253_v28 = vpop.permute.xlu0 %1252 }
 0x20a   :  { %2582 = vpow2.f32 %v1212_v1  ;;  %2417 = vmatprep.subr.bf16.mxu0 %v1253_v28  ;;  %v1141_v10 = vmax.f32 %v1109_v25, %v1125_v46  ;;  %v3508_v1 = vpop.xlane.xlu1 %1170  ;;  %v1124_v2 = vmul.f32 0.2, %v1108_v13 }
 0x20b   :  { %2418 = vmatpush3.bf16.msra.mxu0 %v1253_v28 }
 0x20c   :  { %v3484_v60 = vpop.f32.mrb[4].mxu0  ;;  %v3511_v28 = vadd.f32 %v4398_v24, %v1141_v10  ;;  %v1140_v49 = vmax.f32 %v1108_v13, %v1124_v2  ;;  %v1561_v10 = vadd.f32 %v3319_v54, %v3420_v21 }
 0x20d   :  { %4389 = vst [vmem:[#allocation6_spill] sm:$0xff] %v3484_v60  ;;  %v1706_v48 = vpop.permute.xlu0 %1705  ;;  %v3486_v23 = vpop.f32.mrb[5].mxu0 }
 0x20e   :  { %4390 = vst [vmem:[#allocation7_spill] sm:$0xff] %v3486_v23  ;;  %v3488_v12 = vpop.f32.mrb[6].mxu0  ;;  %2449 = vmatprep.subr.bf16.mxu1 %v1706_v48  ;;  %v2581_v19 = vpop.eup %2580  ;;  %4399 = vst [vmem:[#allocation16_spill] sm:$0xff] %v3511_v28  ;;  %v1577_v57 = vmul.f32 0.2, %v1561_v10 }
 0x20f   :  { %4391 = vst [vmem:[#allocation5_spill] sm:$0xff] %v3488_v12  ;;  %v3490_v62 = vpop.f32.mrb[7].mxu0  ;;  %2450 = vmatpush3.bf16.msra.mxu1 %v1706_v48  ;;  %v1618_v47 = vpop.xlane.xlu1 %1617 }
 0x210   :  { %4392 = vst [vmem:[#allocation9_spill] sm:$0xff] %v3490_v62  ;;  %v1593_v2 = vmax.f32 %v1561_v10, %v1577_v57  ;;  %v1563_v10 = vadd.f32 %v3319_v54, %v3430_v41 }
 0x214   :  { %v2583_v44 = vpop.eup %2582  ;;  %v3494_v18 = vpop.f32.mrb[8].mxu0 }
 0x215   :  { %4393 = vst [vmem:[#allocation11_spill] sm:$0xff] %v3494_v18  ;;  %v1244_v30 = vpack.c.bf16 %v2581_v19, %v2583_v44  ;;  %v3499_v3 = vpop.f32.mrb[9].mxu0  ;;  %v1127_v44 = vmul.f32 0.2, %v1111_v50 }
 0x216   :  { %4395 = vst [vmem:[#allocation12_spill] sm:$0xff] %v3499_v3  ;;  %v3501_v4 = vpop.f32.mrb[10].mxu0 }
 0x217   :  { %4396 = vst [vmem:[#allocation10_spill] sm:$0xff] %v3501_v4  ;;  %1629 = vmax.xlane.f32.xlu1 %v3497_v20  ;;  %2433 = vmatprep.mubr.bf16.mxu0 %v1244_v30  ;;  %v3504_v31 = vpop.f32.mrb[11].mxu0  ;;  %v1649_v30 = vsub.f32 %v3362_v39, %v1618_v47  ;;  %v1143_v6 = vmax.f32 %v1111_v50, %v1127_v44 }
 0x218   :  { %4397 = vst [vmem:[#allocation24_spill] sm:$0xff] %v3504_v31  ;;  %v1562_v20 = vadd.f32 %v3319_v54, %v1523_v45  ;;  %v2776_v45 = vld [vmem:[%s4259_s0 + $0x20] sm:$0xff]  }
 0x219   :  { %v1665_v63 = vmul.f32 1.442695, %v1649_v30  ;;  %v3534_v21 = vadd.f32 %v4403_v14, %v1143_v6 }
 0x21a   :  { %v1578_v13 = vmul.f32 0.2, %v1562_v20 }
 0x21b   :  { %1182 = vmax.xlane.f32.xlu1 %v3511_v28  ;;  %v3529_v28 = vadd.f32 %v3061_v52, %v1140_v49  ;;  %4404 = vst [vmem:[#allocation18_spill] sm:$0xff] %v3534_v21  ;;  %2584 = vpow2.f32 %v1665_v63  ;;  %v1110_v49 = vadd.f32 %v3311_v16, %v3417_v22 }
 0x21c   :  { %v3516_v25 = vpop.f32.mrb[12].mxu0 }
 0x21d   :  { %4400 = vst [vmem:[#allocation25_spill] sm:$0xff] %v3516_v25  ;;  %v3518_v48 = vpop.f32.mrb[13].mxu0  ;;  %4402 = vst [vmem:[#allocation27_spill] sm:$0xff] %v3529_v28 }
 0x21e   :  { %4401 = vst [vmem:[#allocation26_spill] sm:$0xff] %v3518_v48  ;;  %v3520_v46 = vpop.f32.mrb[14].mxu0 }
 0x21f   :  { %v3522_v19 = vpop.f32.mrb[15].mxu0 }
 0x225   :  { %v2585_v6 = vpop.eup %2584 }
 0x226   :  { %v1620_v38 = vpop.xlane.xlu1 %1619 }
 0x227   :  { %v1650_v26 = vsub.f32 %v3385_v36, %v1620_v38  ;;  %1180 = vmax.xlane.f32.xlu0 %v3529_v28  ;;  %v1594_v36 = vmax.f32 %v1562_v20, %v1578_v13  ;;  %v3544_v38 = vadd.f32 %v3061_v52, %v1593_v2  ;;  %v2787_v20 = vmov 8  }
 0x228   :  { %2507 = vset.pattern.permute.xlu0 %v2787_v20  ;;  %2506 = vset.pattern.permute.xlu1 %v2787_v20  ;;  %v1579_v13 = vmul.f32 0.2, %v1563_v10  ;;  %v1564_v20 = vadd.f32 %v3319_v54, %v3438_v58  ;;  %v2777_v58 = vld [vmem:[%s4259_s0 + $0x28] sm:$0xff]  }
 0x229   :  { %v1667_v11 = vmul.f32 1.442695, %v1650_v26  ;;  %4406 = vst [vmem:[#allocation29_spill] sm:$0xff] %v3544_v38  ;;  %v3548_v63 = vadd.f32 %v4398_v24, %v1594_v36  ;;  %v1126_v24 = vmul.f32 0.2, %v1110_v49 }
 0x22a   :  { %v3536_v39 = vpop.xlane.xlu1 %1621  ;;  %v1595_v2 = vmax.f32 %v1563_v10, %v1579_v13  ;;  %v1113_v10 = vadd.f32 %v3311_v16, %v3445_v51 }
 0x22b   :  { %4405 = vst [vmem:[#allocation28_spill] sm:$0xff] %v3536_v39  ;;  %2586 = vpow2.f32 %v1667_v11  ;;  %1186 = vmax.xlane.f32.xlu0 %v3534_v21  ;;  %4407 = vst [vmem:[#allocation30_spill] sm:$0xff] %v3548_v63  ;;  %v1142_v57 = vmax.f32 %v1110_v49, %v1126_v24  ;;  %v1580_v24 = vmul.f32 0.2, %v1564_v20 }
 0x22c   :  { %1260 = vrot.lane.b32.xlu1 %v2776_v45, %s2785_s8  ;;  %2588 = vrcp.f32 %v3478_v9  ;;  %v4429_v9 = vld [vmem:[#allocation13_spill] sm:$0xff] }
 0x22d   :  { %v3561_v36 = vadd.f32 %v3081_v34, %v1142_v57  ;;  %v1596_v13 = vmax.f32 %v1564_v20, %v1580_v24  ;;  %2590 = vrcp.f32 %v3494_v18 }
 0x22e   :  { %v1255_v26 = vpop.permute.xlu1 %1254  ;;  %2592 = vrcp.f32 %v3518_v48 }
 0x22f   :  { %1633 = vmax.xlane.f32.xlu0 %v3544_v38  ;;  %2419 = vmatprep.subr.bf16.mxu0 %v1255_v26  ;;  %4410 = vst [vmem:[#allocation33_spill] sm:$0xff] %v3561_v36  ;;  %v3603_v51 = vadd.f32 %v4403_v14, %v1596_v13  ;;  %2594 = vrcp.f32 %v3516_v25 }
 0x230   :  { %2420 = vmatpush3.bf16.msra.mxu0 %v1255_v26 }
 0x231   :  { %4412 = vst [vmem:[#allocation35_spill] sm:$0xff] %v3603_v51 }
 0x232   :  { %v1708_v11 = vpop.permute.xlu1 %1707 }
 0x233   :  { %1635 = vmax.xlane.f32.xlu0 %v3548_v63  ;;  %2451 = vmatprep.subr.bf16.mxu1 %v1708_v11 }
 0x234   :  { %2452 = vmatpush3.bf16.msra.mxu1 %v1708_v11 }
 0x235   :  { %v2587_v50 = vpop.eup %2586 }
 0x236   :  { %v1697_v47 = vpack.c.bf16 %v2587_v50, %v2585_v6  ;;  %v3573_v6 = vadd.f32 %v3081_v34, %v1595_v2  ;;  %v1129_v2 = vmul.f32 0.2, %v1113_v10 }
 0x238   :  { %2465 = vmatprep.mubr.bf16.mxu1 %v1697_v47  ;;  %4411 = vst [vmem:[#allocation34_spill] sm:$0xff] %v3573_v6 }
 0x23e   :  { %v3551_v52 = vpop.xlane.xlu0 %1623 }
 0x23f   :  { %4408 = vst [vmem:[#allocation31_spill] sm:$0xff] %v3551_v52 }
 0x242   :  { %v3555_v44 = vpop.xlane.xlu0 %1174 }
 0x243   :  { %4409 = vst [vmem:[#allocation32_spill] sm:$0xff] %v3555_v44 }
 0x246   :  { %v1257_v30 = vpop.permute.xlu0 %1256 }
 0x247   :  { %2421 = vmatprep.subr.bf16.mxu0 %v1257_v30 }
 0x248   :  { %2422 = vmatpush3.bf16.msra.mxu0 %v1257_v30 }
 0x249   :  { %1713 = vrot.lane.b32.xlu0 %v2776_v45, %s2786_s9 }
 0x24f   :  { %v3563_v26 = vpop.f32.mrb[0].mxu1 }
 0x250   :  { %v3565_v22 = vpop.f32.mrb[1].mxu1  ;;  %1184 = vmax.xlane.f32.xlu1 %v3561_v36  ;;  %v1145_v36 = vmax.f32 %v1113_v10, %v1129_v2 }
 0x251   :  { %v3568_v11 = vpop.f32.mrb[2].mxu1 }
 0x252   :  { %v3570_v41 = vpop.f32.mrb[3].mxu1  ;;  %v3618_v39 = vadd.f32 %v3121_v33, %v1145_v36  ;;  %v2778_v36 = vld [vmem:[%s4259_s0 + $0x30] sm:$0xff]  }
 0x253   :  { %2596 = vrcp.f32 %v3570_v41 }
 0x254   :  { %1637 = vmax.xlane.f32.xlu1 %v3573_v6  ;;  %4415 = vst [vmem:[#allocation38_spill] sm:$0xff] %v3618_v39 }
 0x257   :  { %v3576_v45 = vpop.f32.mrb[4].mxu1 }
 0x258   :  { %v3578_v50 = vpop.f32.mrb[5].mxu1 }
 0x259   :  { %v3580_v47 = vpop.f32.mrb[6].mxu1  ;;  %2598 = vrcp.f32 %v3578_v50 }
 0x25a   :  { %v3584_v49 = vpop.f32.mrb[7].mxu1  ;;  %2600 = vrcp.f32 %v3576_v45 }
 0x25b   :  { %2602 = vrcp.f32 %v3474_v37 }
 0x25c   :  { %2604 = vrcp.f32 %v3580_v47 }
 0x25d   :  { %2606 = vrcp.f32 %v3471_v15  ;;  %v4427_v15 = vld [vmem:[#allocation20_spill] sm:$0xff] }
 0x25f   :  { %v3588_v30 = vpop.f32.mrb[8].mxu1 }
 0x260   :  { %v3590_v34 = vpop.f32.mrb[9].mxu1 }
 0x261   :  { %v3592_v57 = vpop.f32.mrb[10].mxu1  ;;  %2608 = vrcp.f32 %v3590_v34 }
 0x262   :  { %v3594_v6 = vpop.f32.mrb[11].mxu1  ;;  %2610 = vrcp.f32 %v3476_v56 }
 0x263   :  { %v3596_v21 = vpop.xlane.xlu1 %1172  ;;  %2612 = vrcp.f32 %v3594_v6 }
 0x264   :  { %2614 = vrcp.f32 %v3486_v23 }
 0x265   :  { %1262 = vrot.lane.b32.xlu1 %v2777_v58, %s2785_s8  ;;  %2616 = vrcp.f32 %v3592_v57 }
 0x266   :  { %2618 = vrcp.f32 %v3490_v62 }
 0x267   :  { %v3605_v38 = vpop.f32.mrb[12].mxu1  ;;  %v3607_v63 = vpop.xlane.xlu1 %1178 }
 0x268   :  { %4413 = vst [vmem:[#allocation36_spill] sm:$0xff] %v3607_v63  ;;  %v3609_v20 = vpop.f32.mrb[13].mxu1  ;;  %1639 = vmax.xlane.f32.xlu0 %v3603_v51 }
 0x269   :  { %v3612_v24 = vpop.f32.mrb[14].mxu1  ;;  %1715 = vrot.lane.b32.xlu1 %v2777_v58, %s2786_s9  ;;  %v1112_v58 = vadd.f32 %v3311_v16, %v3373_v40  ;;  %v1565_v40 = vadd.f32 %v3319_v54, %v3457_v17  ;;  %v1114_v17 = vadd.f32 %v3311_v16, %v3450_v61 }
 0x26a   :  { %4414 = vst [vmem:[#allocation37_spill] sm:$0xff] %v3612_v24  ;;  %v3615_v28 = vpop.f32.mrb[15].mxu1 }
 0x26b   :  { %v3620_v10 = vpop.xlane.xlu1 %1625  ;;  %v1581_v35 = vmul.f32 0.2, %v1565_v40 }
 0x26c   :  { %4416 = vst [vmem:[#allocation39_spill] sm:$0xff] %v3620_v10  ;;  %1190 = vmax.xlane.f32.xlu0 %v3618_v39  ;;  %v1128_v39 = vmul.f32 0.2, %v1112_v58 }
 0x26f   :  { %v3623_v14 = vpop.xlane.xlu1 %1627 }
 0x270   :  { %4417 = vst [vmem:[#allocation40_spill] sm:$0xff] %v3623_v14 }
 0x273   :  { %v1710_v13 = vpop.permute.xlu1 %1709 }
 0x274   :  { %2453 = vmatprep.subr.bf16.mxu1 %v1710_v13 }
 0x275   :  { %2454 = vmatpush3.bf16.msra.mxu1 %v1710_v13  ;;  %v1115_v13 = vadd.f32 %v3311_v16, %v3375_v55  ;;  %v1597_v55 = vmax.f32 %v1565_v40, %v1581_v35 }
 0x277   :  { %v3625_v2 = vpop.xlane.xlu0 %1176  ;;  %v4426_v56 = vld [vmem:[#allocation40_spill] sm:$0xff] }
 0x278   :  { %4418 = vst [vmem:[#allocation41_spill] sm:$0xff] %v3625_v2  ;;  %v1131_v2 = vmul.f32 0.2, %v1115_v13 }
 0x27a   :  { %v1147_v14 = vmax.f32 %v1115_v13, %v1131_v2  ;;  %v2589_v13 = vpop.eup %2588  ;;  %2620 = vrcp.f32 %v3615_v28 }
 0x27b   :  { %v3627_v51 = vpop.xlane.xlu0 %1631 }
 0x27c   :  { %4419 = vst [vmem:[#allocation42_spill] sm:$0xff] %v3627_v51  ;;  %v1144_v51 = vmax.f32 %v1112_v58, %v1128_v39  ;;  %v3646_v44 = vadd.f32 %v3136_v29, %v1147_v14 }
 0x27e   :  { %v3642_v52 = vadd.f32 %v3096_v32, %v1144_v51  ;;  %v1568_v51 = vadd.f32 %v3319_v54, %v3462_v7 }
 0x27f   :  { %v1259_v63 = vpop.permute.xlu0 %1258 }
 0x280   :  { %2423 = vmatprep.subr.bf16.mxu0 %v1259_v63  ;;  %v1584_v2 = vmul.f32 0.2, %v1568_v51 }
 0x281   :  { %2424 = vmatpush3.bf16.msra.mxu0 %v1259_v63  ;;  %v1566_v63 = vadd.f32 %v3319_v54, %v3464_v27  ;;  %v1130_v27 = vmul.f32 0.2, %v1114_v17 }
 0x282   :  { %1264 = vrot.lane.b32.xlu0 %v2778_v36, %s2785_s8 }
 0x283   :  { %v1712_v10 = vpop.permute.xlu0 %1711  ;;  %v1582_v5 = vmul.f32 0.2, %v1566_v63  ;;  %v1146_v14 = vmax.f32 %v1114_v17, %v1130_v27 }
 0x284   :  { %2455 = vmatprep.subr.bf16.mxu1 %v1712_v10 }
 0x285   :  { %2456 = vmatpush3.bf16.msra.mxu1 %v1712_v10  ;;  %v1598_v39 = vmax.f32 %v1566_v63, %v1582_v5  ;;  %v3652_v10 = vadd.f32 %v3096_v32, %v1597_v55  ;;  %v1600_v5 = vmax.f32 %v1568_v51, %v1584_v2  ;;  %v3662_v58 = vadd.f32 %v3119_v43, %v1146_v14 }
 0x286   :  { %v1567_v63 = vadd.f32 %v3319_v54, %v3460_v42  ;;  %v2779_v54 = vld [vmem:[%s4259_s0 + $0x38] sm:$0xff]   ;;  %s2788_s0 = smov 8  }
 0x287   :  { %v3658_v35 = vadd.f32 %v3121_v33, %v1598_v39  ;;  %v3666_v32 = vadd.f32 %v3136_v29, %v1600_v5 }
 0x288   :  { %v1583_v17 = vmul.f32 0.2, %v1567_v63 }
 0x28a   :  { %v1599_v14 = vmax.f32 %v1567_v63, %v1583_v17 }
 0x28c   :  { %v3691_v5 = vadd.f32 %v3119_v43, %v1599_v14 }
 0x28d   :  { %1188 = vmax.xlane.f32.xlu1 %v3642_v52 }
 0x291   :  { %1194 = vmax.xlane.f32.xlu1 %v3646_v44 }
 0x295   :  { %1641 = vmax.xlane.f32.xlu1 %v3652_v10 }
 0x299   :  { %1643 = vmax.xlane.f32.xlu1 %v3658_v35 }
 0x2a1   :  { %1192 = vmax.xlane.f32.xlu0 %v3662_v58 }
 0x2a4   :  { %v3668_v16 = vpop.xlane.xlu1 %1629 }
 0x2a5   :  { %1647 = vmax.xlane.f32.xlu0 %v3666_v32 }
 0x2a8   :  { %v3671_v61 = vpop.xlane.xlu1 %1182 }
 0x2aa   :  { %1717 = vrot.lane.b32.xlu1 %v2778_v36, %s2786_s9  ;;  %v2591_v36 = vpop.eup %2590  ;;  %2622 = vrcp.f32 %v3484_v60  ;;  %v4425_v60 = vld [vmem:[#allocation14_spill] sm:$0xff] }
 0x2ab   :  { %v2593_v39 = vpop.eup %2592  ;;  %2624 = vrcp.f32 %v3612_v24 }
 0x2ac   :  { %v1261_v33 = vpop.permute.xlu1 %1260  ;;  %v2595_v51 = vpop.eup %2594  ;;  %2626 = vrcp.f32 %v3488_v12  ;;  %v4424_v12 = vld [vmem:[#allocation31_spill] sm:$0xff] }
 0x2ad   :  { %2425 = vmatprep.subr.bf16.mxu0 %v1261_v33  ;;  %v2597_v2 = vpop.eup %2596  ;;  %2628 = vrcp.f32 %v3499_v3  ;;  %v1652_v62 = vsub.f32 %v4425_v60, %v4424_v12  ;;  %v4435_v12 = vld [vmem:[#allocation27_spill] sm:$0xff] }
 0x2ae   :  { %2426 = vmatpush3.bf16.msra.mxu0 %v1261_v33  ;;  %v2599_v42 = vpop.eup %2598  ;;  %2630 = vrcp.f32 %v3504_v31  ;;  %v4423_v31 = vld [vmem:[#allocation17_spill] sm:$0xff] }
 0x2af   :  { %v2601_v43 = vpop.eup %2600  ;;  %2632 = vrcp.f32 %v3501_v4  ;;  %v1200_v4 = vsub.f32 %v3424_v0, %v3596_v21 }
 0x2b0   :  { %v2603_v33 = vpop.eup %2602  ;;  %2634 = vrcp.f32 %v3522_v19 }
 0x2b1   :  { %v1220_v23 = vmul.f32 1.442695, %v1200_v4  ;;  %v4436_v4 = vld [vmem:[#allocation36_spill] sm:$0xff] }
 0x2b4   :  { %v3676_v7 = vpop.xlane.xlu0 %1180 }
 0x2b8   :  { %v3679_v29 = vpop.xlane.xlu0 %1186 }
 0x2bb   :  { %490 = vperm.xlu0 %2507, %v2589_v13  }
 0x2bc   :  { %v3682_v40 = vpop.xlane.xlu0 %1633 }
 0x2bf   :  { %535 = vperm.xlu0 %2507, %v2591_v36   ;;  %v2605_v36 = vpop.eup %2604  ;;  %2636 = vrcp.f32 %v3520_v46 }
 0x2c0   :  { %v3687_v55 = vpop.xlane.xlu0 %1635  ;;  %v2607_v63 = vpop.eup %2606  ;;  %2638 = vrcp.f32 %v3565_v22 }
 0x2c1   :  { %v2609_v17 = vpop.eup %2608  ;;  %2640 = vrcp.f32 %v3563_v26 }
 0x2c3   :  { %545 = vperm.xlu0 %2507, %v2593_v39  }
 0x2c4   :  { %v1714_v27 = vpop.permute.xlu0 %1713 }
 0x2c5   :  { %2457 = vmatprep.subr.bf16.mxu1 %v1714_v27 }
 0x2c6   :  { %2458 = vmatpush3.bf16.msra.mxu1 %v1714_v27  ;;  %v2611_v27 = vpop.eup %2610  ;;  %2642 = vrcp.f32 %v3568_v11 }
 0x2c7   :  { %555 = vperm.xlu0 %2507, %v2595_v51   ;;  %v2613_v14 = vpop.eup %2612  ;;  %2644 = vrcp.f32 %v3584_v49 }
 0x2cb   :  { %943 = vperm.xlu0 %2507, %v2597_v2   ;;  %v2615_v2 = vpop.eup %2614  ;;  %2646 = vrcp.f32 %v3588_v30 }
 0x2ce   :  { %1645 = vmax.xlane.f32.xlu1 %v3691_v5 }
 0x2cf   :  { %1266 = vrot.lane.b32.xlu0 %v2779_v54, %s2785_s8 }
 0x2d3   :  { %1719 = vrot.lane.b32.xlu0 %v2779_v54, %s2786_s9 }
 0x2d7   :  { %958 = vperm.xlu0 %2507, %v2599_v42   ;;  %v2617_v42 = vpop.eup %2616  ;;  %2648 = vrcp.f32 %v3609_v20 }
 0x2db   :  { %968 = vperm.xlu0 %2507, %v2601_v43   ;;  %v2619_v43 = vpop.eup %2618  ;;  %2650 = vrcp.f32 %v3605_v38 }
 0x2dd   :  { %v3706_v13 = vpop.xlane.xlu1 %1184 }
 0x2df   :  { %485 = vperm.xlu1 %2506, %v2603_v33   ;;  %973 = vperm.xlu0 %2507, %v2605_v36   ;;  %v2621_v33 = vpop.eup %2620 }
 0x2e0   :  { %v2623_v36 = vpop.eup %2622 }
 0x2e1   :  { %v3710_v39 = vpop.xlane.xlu1 %1637 }
 0x2e3   :  { %495 = vperm.xlu1 %2506, %v2607_v63   ;;  %978 = vperm.xlu0 %2507, %v2609_v17   ;;  %v2625_v63 = vpop.eup %2624 }
 0x2e5   :  { %v1263_v51 = vpop.permute.xlu1 %1262 }
 0x2e6   :  { %2427 = vmatprep.subr.bf16.mxu0 %v1263_v51 }
 0x2e7   :  { %500 = vperm.xlu1 %2506, %v2611_v27   ;;  %983 = vperm.xlu0 %2507, %v2613_v14   ;;  %v2627_v27 = vpop.eup %2626 }
 0x2e8   :  { %2428 = vmatpush3.bf16.msra.mxu0 %v1263_v51  ;;  %v2629_v14 = vpop.eup %2628 }
 0x2e9   :  { %v1716_v54 = vpop.permute.xlu1 %1715 }
 0x2ea   :  { %2459 = vmatprep.subr.bf16.mxu1 %v1716_v54 }
 0x2eb   :  { %505 = vperm.xlu1 %2506, %v2615_v2   ;;  %993 = vperm.xlu0 %2507, %v2617_v42  }
 0x2ec   :  { %2460 = vmatpush3.bf16.msra.mxu1 %v1716_v54  ;;  %v2631_v54 = vpop.eup %2630 }
 0x2ed   :  { %v2633_v42 = vpop.eup %2632 }
 0x2ef   :  { %510 = vperm.xlu1 %2506, %v2619_v43   ;;  %1003 = vperm.xlu0 %2507, %v2621_v33   ;;  %v2635_v43 = vpop.eup %2634 }
 0x2f0   :  { %v2637_v33 = vpop.eup %2636 }
 0x2f3   :  { %515 = vperm.xlu1 %2506, %v2623_v36   ;;  %1013 = vperm.xlu0 %2507, %v2625_v63   ;;  %v2639_v36 = vpop.eup %2638 }
 0x2f4   :  { %v2641_v63 = vpop.eup %2640 }
 0x2f5   :  { %v3719_v17 = vpop.xlane.xlu0 %1639 }
 0x2f7   :  { %520 = vperm.xlu1 %2506, %v2627_v27   ;;  %v2643_v27 = vpop.eup %2642 }
 0x2f9   :  { %v3722_v51 = vpop.xlane.xlu0 %1190 }
 0x2fb   :  { %525 = vperm.xlu1 %2506, %v2629_v14   ;;  %v2645_v14 = vpop.eup %2644 }
 0x2fd   :  { %v1265_v2 = vpop.permute.xlu0 %1264 }
 0x2fe   :  { %2429 = vmatprep.subr.bf16.mxu0 %v1265_v2 }
 0x2ff   :  { %2430 = vmatpush3.bf16.msra.mxu0 %v1265_v2  ;;  %530 = vperm.xlu1 %2506, %v2631_v54   ;;  %v2647_v54 = vpop.eup %2646 }
 0x303   :  { %540 = vperm.xlu1 %2506, %v2633_v42  }
 0x307   :  { %550 = vperm.xlu1 %2506, %v2635_v43   ;;  %v2649_v43 = vpop.eup %2648 }
 0x30b   :  { %560 = vperm.xlu1 %2506, %v2637_v33  }
 0x30f   :  { %938 = vperm.xlu1 %2506, %v2639_v36   ;;  %v2651_v36 = vpop.eup %2650 }
 0x313   :  { %948 = vperm.xlu1 %2506, %v2641_v63  }
 0x317   :  { %953 = vperm.xlu1 %2506, %v2643_v27  }
 0x31a   :  { %v3732_v2 = vpop.xlane.xlu1 %1188 }
 0x31b   :  { %963 = vperm.xlu1 %2506, %v2645_v14  }
 0x31e   :  { %v3735_v42 = vpop.xlane.xlu1 %1194 }
 0x31f   :  { %988 = vperm.xlu1 %2506, %v2647_v54   ;;  %v1199_v54 = vsub.f32 %v3356_v8, %v3508_v1  ;;  %v4428_v1 = vld [vmem:[#allocation28_spill] sm:$0xff] }
 0x320   :  { %v1651_v0 = vsub.f32 %v4429_v9, %v4428_v1  ;;  %v4437_v9 = vld [vmem:[#allocation15_spill] sm:$0xff] }
 0x321   :  { %v1218_v3 = vmul.f32 1.442695, %v1199_v54  ;;  %v4433_v54 = vld [vmem:[#allocation41_spill] sm:$0xff] }
 0x322   :  { %v3737_v33 = vpop.xlane.xlu1 %1641 }
 0x323   :  { %998 = vperm.xlu1 %2506, %v2649_v43   ;;  %v1198_v43 = vsub.f32 %v3337_v53, %v3492_v59  ;;  %v4431_v59 = vld [vmem:[#allocation39_spill] sm:$0xff]  ;;  %2652 = vpow2.f32 %v1218_v3 }
 0x324   :  { %2654 = vpow2.f32 %v1220_v23  ;;  %v4440_v23 = vld [vmem:[#allocation8_spill] sm:$0xff] }
 0x325   :  { %v1216_v8 = vmul.f32 1.442695, %v1198_v43  ;;  %v1203_v43 = vsub.f32 %v4437_v9, %v4436_v4  ;;  %v4446_v9 = vld [vmem:[#allocation18_spill] sm:$0xff] }
 0x326   :  { %v3739_v63 = vpop.xlane.xlu1 %1643 }
 0x327   :  { %1008 = vperm.xlu1 %2506, %v2651_v36   ;;  %v4422_v36 = vld [vmem:[#allocation32_spill] sm:$0xff]  ;;  %2656 = vpow2.f32 %v1216_v8 }
 0x32a   :  { %v1718_v27 = vpop.permute.xlu1 %1717 }
 0x32b   :  { %2461 = vmatprep.subr.bf16.mxu1 %v1718_v27 }
 0x32c   :  { %2462 = vmatpush3.bf16.msra.mxu1 %v1718_v27  ;;  %v1201_v27 = vsub.f32 %v4423_v31, %v4422_v36  ;;  %v1671_v31 = vmul.f32 1.442695, %v1652_v62  ;;  %v4434_v36 = vld [vmem:[#allocation2_spill] sm:$0xff] }
 0x32d   :  { %v1202_v24 = vsub.f32 %v4434_v36, %v4433_v54  ;;  %v4442_v54 = vld [vmem:[#allocation42_spill] sm:$0xff] }
 0x32e   :  { %v3741_v25 = vpop.xlane.xlu0 %1192  ;;  %v1222_v53 = vmul.f32 1.442695, %v1201_v27  ;;  %v4443_v36 = vld [vmem:[#allocation22_spill] sm:$0xff] }
 0x32f   :  { %v1224_v3 = vmul.f32 1.442695, %v1202_v24 }
 0x330   :  { %2658 = vpow2.f32 %v1222_v53 }
 0x331   :  { %2660 = vpow2.f32 %v1671_v31 }
 0x332   :  { %v3743_v14 = vpop.xlane.xlu0 %1647 }
 0x33a   :  { %v3745_v48 = vpop.permute.xlu0 %490 }
 0x33b   :  { %4420 = vst [vmem:[#allocation43_spill] sm:$0xff] %v3745_v48  ;;  %v1654_v48 = vsub.f32 %v4427_v15, %v4426_v56  ;;  %v1204_v15 = vsub.f32 %v4435_v12, %v3676_v7  ;;  %v1669_v56 = vmul.f32 1.442695, %v1651_v0  ;;  %v4441_v7 = vld [vmem:[#allocation30_spill] sm:$0xff]  ;;  %v1226_v0 = vmul.f32 1.442695, %v1203_v43 }
 0x33c   :  { %v1658_v8 = vsub.f32 %v4441_v7, %v3687_v55  ;;  %v1656_v12 = vsub.f32 %v4443_v36, %v4442_v54  ;;  %v1208_v55 = vsub.f32 %v3642_v52, %v3732_v2  ;;  %v1207_v43 = vsub.f32 %v4446_v9, %v3679_v29 }
 0x33d   :  { %v1675_v60 = vmul.f32 1.442695, %v1654_v48  ;;  %v1655_v48 = vsub.f32 %v4440_v23, %v3668_v16  ;;  %v4445_v16 = vld [vmem:[#allocation33_spill] sm:$0xff]  ;;  %v1662_v29 = vsub.f32 %v3658_v35, %v3739_v63  ;;  %v1210_v63 = vsub.f32 %v3662_v58, %v3741_v25 }
 0x33e   :  { %v3753_v18 = vpop.permute.xlu0 %535  ;;  %v1679_v4 = vmul.f32 1.442695, %v1656_v12 }
 0x33f   :  { %4421 = vst [vmem:[#allocation44_spill] sm:$0xff] %v3753_v18  ;;  %v4432_v18 = vld [vmem:[#allocation19_spill] sm:$0xff]  ;;  %2662 = vpow2.f32 %v1675_v60  ;;  %v1677_v31 = vmul.f32 1.442695, %v1655_v48  ;;  %v1206_v60 = vsub.f32 %v4445_v16, %v3706_v13  ;;  %v1240_v25 = vmul.f32 1.442695, %v1210_v63 }
 0x340   :  { %v1653_v37 = vsub.f32 %v4432_v18, %v4431_v59  ;;  %v4439_v18 = vld [vmem:[#allocation16_spill] sm:$0xff]  ;;  %v1228_v59 = vmul.f32 1.442695, %v1204_v15  ;;  %2664 = vpow2.f32 %v1669_v56  ;;  %v1683_v15 = vmul.f32 1.442695, %v1658_v8  ;;  %v2653_v56 = vpop.eup %2652  ;;  %v4448_v48 = vld [vmem:[#allocation35_spill] sm:$0xff] }
 0x341   :  { %v1205_v62 = vsub.f32 %v4439_v18, %v3671_v61  ;;  %v4444_v61 = vld [vmem:[#allocation29_spill] sm:$0xff]  ;;  %v2655_v18 = vpop.eup %2654  ;;  %v1232_v23 = vmul.f32 1.442695, %v1206_v60  ;;  %v1660_v52 = vsub.f32 %v4448_v48, %v3719_v17  ;;  %v1661_v17 = vsub.f32 %v3652_v10, %v3737_v33 }
 0x342   :  { %v3763_v21 = vpop.permute.xlu0 %545  ;;  %v1673_v27 = vmul.f32 1.442695, %v1653_v37  ;;  %v1657_v24 = vsub.f32 %v4444_v61, %v3682_v40  ;;  %v2657_v13 = vpop.eup %2656  ;;  %v1211_v10 = vsub.f32 %v3646_v44, %v3735_v42 }
 0x343   :  { %4430 = vst [vmem:[#allocation32_spill] sm:$0xff] %v3763_v21  ;;  %v1230_v37 = vmul.f32 1.442695, %v1205_v62  ;;  %v4447_v62 = vld [vmem:[#allocation38_spill] sm:$0xff]  ;;  %v2659_v2 = vpop.eup %2658  ;;  %v1245_v7 = vpack.c.bf16 %v2653_v56, %v2657_v13  ;;  %v1687_v35 = vmul.f32 1.442695, %v1660_v52 }
 0x344   :  { %2666 = vpow2.f32 %v1673_v27  ;;  %v1681_v40 = vmul.f32 1.442695, %v1657_v24  ;;  %v2661_v8 = vpop.eup %2660  ;;  %v1246_v12 = vpack.c.bf16 %v2659_v2, %v2655_v18  ;;  %v1689_v56 = vmul.f32 1.442695, %v1661_v17 }
 0x345   :  { %2668 = vpow2.f32 %v1224_v3  ;;  %v1209_v3 = vsub.f32 %v4447_v62, %v3722_v51  ;;  %v4449_v51 = vld [vmem:[#allocation34_spill] sm:$0xff]  ;;  %v1664_v18 = vsub.f32 %v3666_v32, %v3743_v14 }
 0x346   :  { %v3773_v1 = vpop.permute.xlu0 %555  ;;  %2670 = vpow2.f32 %v1228_v59  ;;  %v1236_v59 = vmul.f32 1.442695, %v1208_v55  ;;  %v1659_v54 = vsub.f32 %v4449_v51, %v3710_v39  ;;  %v1691_v39 = vmul.f32 1.442695, %v1662_v29 }
 0x347   :  { %4438 = vst [vmem:[#allocation17_spill] sm:$0xff] %v3773_v1  ;;  %2672 = vpow2.f32 %v1226_v0  ;;  %v1234_v0 = vmul.f32 1.442695, %v1207_v43  ;;  %v1238_v61 = vmul.f32 1.442695, %v1209_v3 }
 0x348   :  { %2674 = vpow2.f32 %v1230_v37  ;;  %v1695_v52 = vmul.f32 1.442695, %v1664_v18 }
 0x349   :  { %2676 = vpow2.f32 %v1677_v31  ;;  %v2663_v37 = vpop.eup %2662 }
 0x34a   :  { %v3783_v53 = vpop.permute.xlu0 %943  ;;  %2678 = vpow2.f32 %v1683_v15  ;;  %v2665_v24 = vpop.eup %2664  ;;  %v1685_v15 = vmul.f32 1.442695, %v1659_v54 }
 0x34b   :  { %2680 = vpow2.f32 %v1679_v4  ;;  %v1698_v16 = vpack.c.bf16 %v2661_v8, %v2665_v24 }
 0x34c   :  { %2682 = vpow2.f32 %v1681_v40 }
 0x34d   :  { %2684 = vpow2.f32 %v1232_v23 }
 0x34e   :  { %v1267_v27 = vpop.permute.xlu0 %1266  ;;  %v2667_v31 = vpop.eup %2666  ;;  %2686 = vpow2.f32 %v1236_v59 }
 0x34f   :  { %2431 = vmatprep.subr.bf16.mxu0 %v1267_v27  ;;  %v2669_v60 = vpop.eup %2668  ;;  %2688 = vpow2.f32 %v1234_v0  ;;  %v1699_v33 = vpack.c.bf16 %v2663_v37, %v2667_v31 }
 0x350   :  { %2432 = vmatpush3.bf16.msra.mxu0 %v1267_v27  ;;  %v2671_v55 = vpop.eup %2670  ;;  %2690 = vpow2.f32 %v1238_v61  ;;  %v1242_v27 = vmul.f32 1.442695, %v1211_v10 }
 0x351   :  { %v2673_v4 = vpop.eup %2672  ;;  %2692 = vpow2.f32 %v1687_v35 }
 0x352   :  { %v1720_v36 = vpop.permute.xlu0 %1719  ;;  %v2675_v58 = vpop.eup %2674  ;;  %2694 = vpow2.f32 %v1691_v39  ;;  %v1247_v9 = vpack.c.bf16 %v2673_v4, %v2669_v60 }
 0x353   :  { %2434 = vmatmul.mubr.bf16.vlgmr.msra.gmra.mrb[16].mxu0 %v1245_v7  ;;  %2463 = vmatprep.subr.bf16.mxu1 %v1720_v36  ;;  %v2677_v43 = vpop.eup %2676  ;;  %2696 = vpow2.f32 %v1685_v15  ;;  %v1248_v40 = vpack.c.bf16 %v2675_v58, %v2671_v55 }
 0x354   :  { %2437 = vmatprep.mubr.bf16.mxu0 %v1246_v12  ;;  %2464 = vmatpush3.bf16.msra.mxu1 %v1720_v36  ;;  %v2679_v44 = vpop.eup %2678  ;;  %2698 = vpow2.f32 %v1689_v56 }
 0x355   :  { %v2681_v62 = vpop.eup %2680  ;;  %2700 = vpow2.f32 %v1240_v25 }
 0x356   :  { %v2683_v13 = vpop.eup %2682  ;;  %v1700_v23 = vpack.c.bf16 %v2681_v62, %v2677_v43  ;;  %2702 = vpow2.f32 %v1242_v27 }
 0x357   :  { %2466 = vmatmul.mubr.bf16.vlgmr.msra.gmra.mrb[16].mxu1 %v1698_v16  ;;  %v2685_v48 = vpop.eup %2684  ;;  %v1701_v59 = vpack.c.bf16 %v2679_v44, %v2683_v13 }
 0x358   :  { %2469 = vmatprep.mubr.bf16.mxu1 %v1699_v33  ;;  %v2687_v29 = vpop.eup %2686 }
 0x359   :  { %v2689_v32 = vpop.eup %2688 }
 0x35a   :  { %v2691_v14 = vpop.eup %2690  ;;  %v1249_v8 = vpack.c.bf16 %v2689_v32, %v2685_v48 }
 0x35b   :  { %v1646_v42 = vpop.xlane.xlu1 %1645  ;;  %2438 = vmatmul.mubr.bf16.gmra.mrb[20].mxu0 %v1247_v9  ;;  %v2693_v0 = vpop.eup %2692 }
 0x35c   :  { %v1663_v3 = vsub.f32 %v3691_v5, %v1646_v42  ;;  %2441 = vmatprep.mubr.bf16.mxu0 %v1248_v40  ;;  %v1250_v5 = vpack.c.bf16 %v2691_v14, %v2687_v29  ;;  %v2695_v51 = vpop.eup %2694 }
 0x35d   :  { %v2697_v36 = vpop.eup %2696 }
 0x35e   :  { %v1693_v2 = vmul.f32 1.442695, %v1663_v3  ;;  %v2699_v12 = vpop.eup %2698  ;;  %v1702_v37 = vpack.c.bf16 %v2693_v0, %v2697_v36 }
 0x35f   :  { %v3810_v7 = vpop.permute.xlu1 %485  ;;  %2470 = vmatmul.mubr.bf16.gmra.mrb[20].mxu1 %v1700_v23  ;;  %v2701_v61 = vpop.eup %2700  ;;  %v1703_v17 = vpack.c.bf16 %v2695_v51, %v2699_v12 }
 0x360   :  { %2704 = vpow2.f32 %v1693_v2  ;;  %2473 = vmatprep.mubr.bf16.mxu1 %v1701_v59  ;;  %v2703_v35 = vpop.eup %2702 }
 0x361   :  { %2706 = vpow2.f32 %v1695_v52  ;;  %v1251_v63 = vpack.c.bf16 %v2703_v35, %v2701_v61 }
 0x363   :  { %v3812_v54 = vpop.permute.xlu1 %495  ;;  %2442 = vmatmul.mubr.bf16.gmra.mrb[24].mxu0 %v1249_v8 }
 0x364   :  { %2445 = vmatprep.mubr.bf16.mxu0 %v1250_v5 }
 0x367   :  { %v3814_v24 = vpop.permute.xlu1 %500  ;;  %2474 = vmatmul.mubr.bf16.gmra.mrb[24].mxu1 %v1702_v37 }
 0x368   :  { %4450 = vst [vmem:[#allocation31_spill] sm:$0xff] %v3814_v24  ;;  %2477 = vmatprep.mubr.bf16.mxu1 %v1703_v17  ;;  %v1017_v24 = vmul.f32 %v3783_v53, %v3570_v41 }
 0x36a   :  { %v2705_v31 = vpop.eup %2704 }
 0x36b   :  { %v3816_v39 = vpop.permute.xlu1 %505  ;;  %2446 = vmatmul.mubr.bf16.gmra.mrb[28].mxu0 %v1251_v63  ;;  %v2707_v16 = vpop.eup %2706 }
 0x36c   :  { %4451 = vst [vmem:[#allocation14_spill] sm:$0xff] %v3816_v39  ;;  %v1704_v60 = vpack.c.bf16 %v2707_v16, %v2705_v31 }
 0x36f   :  { %v3818_v15 = vpop.permute.xlu1 %510  ;;  %2478 = vmatmul.mubr.bf16.gmra.mrb[28].mxu1 %v1704_v60 }
 0x370   :  { %4452 = vst [vmem:[#allocation40_spill] sm:$0xff] %v3818_v15 }
 0x373   :  { %v3820_v10 = vpop.permute.xlu1 %515 }
 0x374   :  { %4453 = vst [vmem:[#allocation20_spill] sm:$0xff] %v3820_v10 }
 0x377   :  { %v3822_v33 = vpop.permute.xlu1 %520 }
 0x378   :  { %4454 = vst [vmem:[#allocation28_spill] sm:$0xff] %v3822_v33 }
 0x37b   :  { %v3824_v55 = vpop.permute.xlu1 %525 }
 0x37c   :  { %4455 = vst [vmem:[#allocation13_spill] sm:$0xff] %v3824_v55 }
 0x37f   :  { %v3826_v56 = vpop.permute.xlu1 %530 }
 0x380   :  { %4456 = vst [vmem:[#allocation39_spill] sm:$0xff] %v3826_v56 }
 0x383   :  { %v3828_v4 = vpop.permute.xlu1 %540 }
 0x384   :  { %4457 = vst [vmem:[#allocation19_spill] sm:$0xff] %v3828_v4  ;;  %v959_v4 = vpop.permute.xlu0 %958 }
 0x387   :  { %v551_v25 = vpop.permute.xlu1 %550 }
 0x388   :  { %v3831_v58 = vmul.f32 %v551_v25, %v3522_v19 }
 0x38a   :  { %4458 = vst [vmem:[#allocation41_spill] sm:$0xff] %v3831_v58 }
 0x38b   :  { %v561_v9 = vpop.permute.xlu1 %560 }
 0x38c   :  { %v3834_v43 = vmul.f32 %v3520_v46, %v561_v9 }
 0x38e   :  { %4459 = vst [vmem:[#allocation2_spill] sm:$0xff] %v3834_v43 }
 0x38f   :  { %v939_v56 = vpop.permute.xlu1 %938 }
 0x390   :  { %v1016_v39 = vmul.f32 %v939_v56, %v3565_v22  ;;  %v1020_v22 = vmul.f32 %v959_v4, %v3578_v50 }
 0x393   :  { %v949_v33 = vpop.permute.xlu1 %948 }
 0x426   :  { %v3836_v27 = vpop.f32.mrb[16].mxu0 }
 0x427   :  { %v3838_v18 = vpop.f32.mrb[17].mxu0 }
 0x428   :  { %2708 = vrcp.f32 %v3838_v18  ;;  %v3841_v40 = vpop.f32.mrb[18].mxu0 }
 0x429   :  { %v3843_v44 = vpop.f32.mrb[19].mxu0 }
 0x42a   :  { %2710 = vrcp.f32 %v3843_v44  ;;  %v3846_v42 = vpop.f32.mrb[16].mxu1 }
 0x42b   :  { %v3848_v19 = vpop.f32.mrb[17].mxu1  ;;  %2712 = vrcp.f32 %v3836_v27 }
 0x42c   :  { %v3851_v46 = vpop.f32.mrb[18].mxu1  ;;  %2714 = vrcp.f32 %v3841_v40 }
 0x42d   :  { %v3853_v62 = vpop.f32.mrb[19].mxu1 }
 0x42e   :  { %v3856_v3 = vpop.f32.mrb[20].mxu0 }
 0x42f   :  { %v3858_v13 = vpop.f32.mrb[21].mxu0 }
 0x430   :  { %2716 = vrcp.f32 %v3858_v13  ;;  %v3861_v23 = vpop.f32.mrb[22].mxu0 }
 0x431   :  { %v3863_v48 = vpop.f32.mrb[23].mxu0 }
 0x432   :  { %v2709_v52 = vpop.eup %2708  ;;  %2718 = vrcp.f32 %v3863_v48  ;;  %v3866_v2 = vpop.f32.mrb[20].mxu1 }
 0x433   :  { %v3868_v59 = vpop.f32.mrb[21].mxu1  ;;  %1391 = vperm.xlu1 %2506, %v2709_v52   ;;  %2720 = vrcp.f32 %v3856_v3 }
 0x434   :  { %v2711_v29 = vpop.eup %2710  ;;  %v3871_v32 = vpop.f32.mrb[22].mxu1  ;;  %2722 = vrcp.f32 %v3861_v23 }
 0x435   :  { %v3873_v14 = vpop.f32.mrb[23].mxu1  ;;  %1396 = vperm.xlu0 %2507, %v2711_v29   ;;  %v2713_v8 = vpop.eup %2712 }
 0x436   :  { %v3876_v0 = vpop.f32.mrb[24].mxu0  ;;  %v2715_v51 = vpop.eup %2714 }
 0x437   :  { %v3878_v5 = vpop.f32.mrb[25].mxu0  ;;  %1401 = vperm.xlu1 %2506, %v2713_v8  }
 0x438   :  { %2724 = vrcp.f32 %v3878_v5  ;;  %v3881_v36 = vpop.f32.mrb[26].mxu0 }
 0x439   :  { %1406 = vperm.xlu0 %2507, %v2715_v51   ;;  %v3883_v12 = vpop.f32.mrb[27].mxu0 }
 0x43a   :  { %v2717_v37 = vpop.eup %2716  ;;  %2726 = vrcp.f32 %v3883_v12  ;;  %v3886_v61 = vpop.f32.mrb[24].mxu1 }
 0x43b   :  { %v3888_v17 = vpop.f32.mrb[25].mxu1  ;;  %1411 = vperm.xlu1 %2506, %v2717_v37   ;;  %2728 = vrcp.f32 %v3876_v0 }
 0x43c   :  { %v2719_v35 = vpop.eup %2718  ;;  %v3891_v63 = vpop.f32.mrb[26].mxu1  ;;  %2730 = vrcp.f32 %v3881_v36 }
 0x43d   :  { %v3893_v31 = vpop.f32.mrb[27].mxu1  ;;  %1416 = vperm.xlu0 %2507, %v2719_v35   ;;  %v2721_v16 = vpop.eup %2720 }
 0x43e   :  { %v3896_v60 = vpop.f32.mrb[28].mxu0  ;;  %v2723_v9 = vpop.eup %2722 }
 0x43f   :  { %v3898_v25 = vpop.f32.mrb[29].mxu0  ;;  %1421 = vperm.xlu1 %2506, %v2721_v16  }
 0x440   :  { %2732 = vrcp.f32 %v3898_v25  ;;  %v3901_v52 = vpop.f32.mrb[30].mxu0 }
 0x441   :  { %1426 = vperm.xlu0 %2507, %v2723_v9   ;;  %v3903_v29 = vpop.f32.mrb[31].mxu0 }
 0x442   :  { %v2725_v8 = vpop.eup %2724  ;;  %2734 = vrcp.f32 %v3903_v29  ;;  %v3906_v51 = vpop.f32.mrb[28].mxu1 }
 0x443   :  { %v3908_v37 = vpop.f32.mrb[29].mxu1  ;;  %1431 = vperm.xlu1 %2506, %v2725_v8   ;;  %2736 = vrcp.f32 %v3896_v60 }
 0x444   :  { %v2727_v35 = vpop.eup %2726  ;;  %v3911_v16 = vpop.f32.mrb[30].mxu1  ;;  %2738 = vrcp.f32 %v3901_v52 }
 0x445   :  { %v3913_v43 = vpop.f32.mrb[31].mxu1  ;;  %1436 = vperm.xlu0 %2507, %v2727_v35   ;;  %v2729_v58 = vpop.eup %2728  ;;  %2740 = vrcp.f32 %v3848_v19 }
 0x446   :  { %v2731_v9 = vpop.eup %2730  ;;  %2742 = vrcp.f32 %v3853_v62 }
 0x447   :  { %1441 = vperm.xlu1 %2506, %v2729_v58   ;;  %2744 = vrcp.f32 %v3846_v42 }
 0x448   :  { %2746 = vrcp.f32 %v3851_v46 }
 0x449   :  { %1446 = vperm.xlu0 %2507, %v2731_v9   ;;  %2748 = vrcp.f32 %v3868_v59 }
 0x44a   :  { %v2733_v1 = vpop.eup %2732  ;;  %2750 = vrcp.f32 %v3873_v14 }
 0x44b   :  { %1451 = vperm.xlu1 %2506, %v2733_v1   ;;  %2752 = vrcp.f32 %v3866_v2 }
 0x44c   :  { %v2735_v8 = vpop.eup %2734  ;;  %2754 = vrcp.f32 %v3871_v32 }
 0x44d   :  { %1456 = vperm.xlu0 %2507, %v2735_v8   ;;  %v2737_v21 = vpop.eup %2736  ;;  %2756 = vrcp.f32 %v3888_v17 }
 0x44e   :  { %v2739_v35 = vpop.eup %2738  ;;  %2758 = vrcp.f32 %v3893_v31 }
 0x44f   :  { %1461 = vperm.xlu1 %2506, %v2737_v21   ;;  %v2741_v58 = vpop.eup %2740  ;;  %2760 = vrcp.f32 %v3886_v61 }
 0x450   :  { %v2743_v9 = vpop.eup %2742  ;;  %2762 = vrcp.f32 %v3891_v63 }
 0x451   :  { %1466 = vperm.xlu0 %2507, %v2739_v35   ;;  %v2745_v1 = vpop.eup %2744  ;;  %2764 = vrcp.f32 %v3908_v37 }
 0x452   :  { %v2747_v8 = vpop.eup %2746  ;;  %2766 = vrcp.f32 %v3913_v43 }
 0x453   :  { %1844 = vperm.xlu1 %2506, %v2741_v58   ;;  %v2749_v21 = vpop.eup %2748  ;;  %2768 = vrcp.f32 %v3906_v51 }
 0x454   :  { %v2751_v35 = vpop.eup %2750  ;;  %2770 = vrcp.f32 %v3911_v16 }
 0x455   :  { %1849 = vperm.xlu0 %2507, %v2743_v9   ;;  %v2753_v58 = vpop.eup %2752 }
 0x456   :  { %v2755_v9 = vpop.eup %2754 }
 0x457   :  { %1854 = vperm.xlu1 %2506, %v2745_v1   ;;  %v2757_v1 = vpop.eup %2756 }
 0x459   :  { %1859 = vperm.xlu0 %2507, %v2747_v8   ;;  %v2759_v8 = vpop.eup %2758 }
 0x45b   :  { %1864 = vperm.xlu1 %2506, %v2749_v21   ;;  %v2761_v21 = vpop.eup %2760 }
 0x45d   :  { %1869 = vperm.xlu0 %2507, %v2751_v35   ;;  %v2763_v35 = vpop.eup %2762 }
 0x45e   :  { %v2765_v55 = vpop.eup %2764 }
 0x45f   :  { %1874 = vperm.xlu1 %2506, %v2753_v58   ;;  %v969_v58 = vpop.permute.xlu0 %968 }
 0x460   :  { %v1022_v53 = vmul.f32 %v3576_v45, %v969_v58 }
 0x461   :  { %1879 = vperm.xlu0 %2507, %v2755_v9   ;;  %v2767_v9 = vpop.eup %2766 }
 0x462   :  { %v2769_v10 = vpop.eup %2768 }
 0x463   :  { %1884 = vperm.xlu1 %2506, %v2757_v1   ;;  %v974_v15 = vpop.permute.xlu0 %973  ;;  %v2771_v1 = vpop.eup %2770 }
 0x465   :  { %1889 = vperm.xlu0 %2507, %v2759_v8   ;;  %v954_v8 = vpop.permute.xlu1 %953 }
 0x467   :  { %1894 = vperm.xlu1 %2506, %v2761_v21   ;;  %v979_v21 = vpop.permute.xlu0 %978 }
 0x469   :  { %1899 = vperm.xlu0 %2507, %v2763_v35   ;;  %v1019_v35 = vmul.f32 %v3568_v11, %v954_v8 }
 0x46b   :  { %1904 = vperm.xlu1 %2506, %v2765_v55   ;;  %v1018_v55 = vmul.f32 %v3563_v26, %v949_v33  ;;  %v984_v56 = vpop.permute.xlu0 %983 }
 0x46c   :  { %v1025_v50 = vmul.f32 %v984_v56, %v3594_v6 }
 0x46d   :  { %1909 = vperm.xlu0 %2507, %v2767_v9  }
 0x46f   :  { %1914 = vperm.xlu1 %2506, %v2769_v10   ;;  %v964_v10 = vpop.permute.xlu1 %963  ;;  %v994_v11 = vpop.permute.xlu0 %993 }
 0x470   :  { %v1021_v41 = vmul.f32 %v964_v10, %v3584_v49  ;;  %v1027_v4 = vmul.f32 %v3592_v57, %v994_v11 }
 0x471   :  { %1919 = vperm.xlu0 %2507, %v2771_v1  }
 0x473   :  { %1954 = vrot.lane.b32.xlu1 %v1016_v39, %s2788_s0  ;;  %v989_v26 = vpop.permute.xlu1 %988  ;;  %v1024_v39 = vmul.f32 %v979_v21, %v3590_v34  ;;  %v1004_v45 = vpop.permute.xlu0 %1003 }
 0x474   :  { %v1026_v33 = vmul.f32 %v3588_v30, %v989_v26  ;;  %v4460_v30 = vld [vmem:[#allocation37_spill] sm:$0xff] }
 0x475   :  { %1956 = vrot.lane.b32.xlu0 %v1017_v24, %s2788_s0  ;;  %v1023_v24 = vmul.f32 %v3580_v47, %v974_v15  ;;  %v1029_v15 = vmul.f32 %v1004_v45, %v3615_v28 }
 0x477   :  { %1958 = vrot.lane.b32.xlu1 %v1018_v55, %s2788_s0  ;;  %v999_v49 = vpop.permute.xlu1 %998  ;;  %v1014_v6 = vpop.permute.xlu0 %1013 }
 0x478   :  { %v1028_v47 = vmul.f32 %v999_v49, %v3609_v20  ;;  %v1031_v9 = vmul.f32 %v4460_v30, %v1014_v6 }
 0x479   :  { %1960 = vrot.lane.b32.xlu0 %v1019_v35, %s2788_s0 }
 0x47b   :  { %1962 = vrot.lane.b32.xlu1 %v1020_v22, %s2788_s0  ;;  %v1009_v34 = vpop.permute.xlu1 %1008 }
 0x47c   :  { %v1030_v58 = vmul.f32 %v3605_v38, %v1009_v34 }
 0x47d   :  { %1964 = vrot.lane.b32.xlu0 %v1021_v41, %s2788_s0 }
 0x47f   :  { %1966 = vrot.lane.b32.xlu1 %v1022_v53, %s2788_s0 }
 0x481   :  { %1968 = vrot.lane.b32.xlu0 %v1023_v24, %s2788_s0 }
 0x483   :  { %1970 = vrot.lane.b32.xlu1 %v1024_v39, %s2788_s0 }
 0x485   :  { %1972 = vrot.lane.b32.xlu0 %v1025_v50, %s2788_s0 }
 0x487   :  { %1974 = vrot.lane.b32.xlu1 %v1026_v33, %s2788_s0 }
 0x489   :  { %1976 = vrot.lane.b32.xlu0 %v1027_v4, %s2788_s0 }
 0x48b   :  { %1978 = vrot.lane.b32.xlu1 %v1028_v47, %s2788_s0 }
 0x48d   :  { %1980 = vrot.lane.b32.xlu0 %v1029_v15, %s2788_s0 }
 0x48f   :  { %1982 = vrot.lane.b32.xlu1 %v1030_v58, %s2788_s0 }
 0x491   :  { %1984 = vrot.lane.b32.xlu0 %v1031_v9, %s2788_s0 }
 0x4b2   :  { %v1392_v57 = vpop.permute.xlu1 %1391 }
 0x4b3   :  { %v1469_v20 = vmul.f32 %v1392_v57, %v3838_v18 }
 0x4b4   :  { %v1397_v1 = vpop.permute.xlu0 %1396 }
 0x4b5   :  { %v1470_v8 = vmul.f32 %v1397_v1, %v3843_v44  ;;  %2018 = vrot.lane.b32.xlu1 %v1469_v20, %s2789_s23 }
 0x4b6   :  { %v1402_v28 = vpop.permute.xlu1 %1401 }
 0x4b7   :  { %v1471_v38 = vmul.f32 %v3836_v27, %v1402_v28  ;;  %2020 = vrot.lane.b32.xlu0 %v1470_v8, %s2789_s23 }
 0x4b8   :  { %v1407_v21 = vpop.permute.xlu0 %1406 }
 0x4b9   :  { %v1472_v55 = vmul.f32 %v3841_v40, %v1407_v21  ;;  %2022 = vrot.lane.b32.xlu1 %v1471_v38, %s2789_s23 }
 0x4ba   :  { %v1412_v35 = vpop.permute.xlu1 %1411 }
 0x4bb   :  { %v1473_v10 = vmul.f32 %v1412_v35, %v3858_v13  ;;  %2024 = vrot.lane.b32.xlu0 %v1472_v55, %s2789_s23 }
 0x4bc   :  { %v1417_v18 = vpop.permute.xlu0 %1416 }
 0x4bd   :  { %v1474_v44 = vmul.f32 %v1417_v18, %v3863_v48  ;;  %2026 = vrot.lane.b32.xlu1 %v1473_v10, %s2789_s23 }
 0x4be   :  { %v1422_v22 = vpop.permute.xlu1 %1421 }
 0x4bf   :  { %v1475_v27 = vmul.f32 %v3856_v3, %v1422_v22  ;;  %2028 = vrot.lane.b32.xlu0 %v1474_v44, %s2789_s23 }
 0x4c0   :  { %v1427_v56 = vpop.permute.xlu0 %1426 }
 0x4c1   :  { %v1476_v40 = vmul.f32 %v3861_v23, %v1427_v56  ;;  %2030 = vrot.lane.b32.xlu1 %v1475_v27, %s2789_s23 }
 0x4c2   :  { %v1432_v41 = vpop.permute.xlu1 %1431 }
 0x4c3   :  { %v1477_v13 = vmul.f32 %v1432_v41, %v3878_v5  ;;  %2032 = vrot.lane.b32.xlu0 %v1476_v40, %s2789_s23 }
 0x4c4   :  { %v1437_v53 = vpop.permute.xlu0 %1436 }
 0x4c5   :  { %v1478_v48 = vmul.f32 %v1437_v53, %v3883_v12  ;;  %2034 = vrot.lane.b32.xlu1 %v1477_v13, %s2789_s23 }
 0x4c6   :  { %v1442_v26 = vpop.permute.xlu1 %1441 }
 0x4c7   :  { %v1479_v3 = vmul.f32 %v3876_v0, %v1442_v26  ;;  %2036 = vrot.lane.b32.xlu0 %v1478_v48, %s2789_s23 }
 0x4c8   :  { %v1447_v24 = vpop.permute.xlu0 %1446 }
 0x4c9   :  { %v1480_v23 = vmul.f32 %v3881_v36, %v1447_v24  ;;  %2038 = vrot.lane.b32.xlu1 %v1479_v3, %s2789_s23 }
 0x4ca   :  { %v1452_v11 = vpop.permute.xlu1 %1451 }
 0x4cb   :  { %v1481_v5 = vmul.f32 %v1452_v11, %v3898_v25  ;;  %2040 = vrot.lane.b32.xlu0 %v1480_v23, %s2789_s23 }
 0x4cc   :  { %v1457_v39 = vpop.permute.xlu0 %1456 }
 0x4cd   :  { %v1482_v12 = vmul.f32 %v1457_v39, %v3903_v29  ;;  %2042 = vrot.lane.b32.xlu1 %v1481_v5, %s2789_s23 }
 0x4ce   :  { %v1462_v50 = vpop.permute.xlu1 %1461 }
 0x4cf   :  { %v1483_v0 = vmul.f32 %v3896_v60, %v1462_v50  ;;  %2044 = vrot.lane.b32.xlu0 %v1482_v12, %s2789_s23 }
 0x4d0   :  { %v1467_v49 = vpop.permute.xlu0 %1466 }
 0x4d1   :  { %v1484_v36 = vmul.f32 %v3901_v52, %v1467_v49  ;;  %2046 = vrot.lane.b32.xlu1 %v1483_v0, %s2789_s23 }
 0x4d2   :  { %v1845_v33 = vpop.permute.xlu1 %1844 }
 0x4d3   :  { %v1922_v25 = vmul.f32 %v1845_v33, %v3848_v19  ;;  %2048 = vrot.lane.b32.xlu0 %v1484_v36, %s2789_s23 }
 0x4d4   :  { %v1850_v45 = vpop.permute.xlu0 %1849 }
 0x4d5   :  { %v1923_v29 = vmul.f32 %v1850_v45, %v3853_v62  ;;  %2082 = vrot.lane.b32.xlu1 %v1922_v25, %s2790_s24  ;;  %v4461_v25 = vld [vmem:[#allocation23_spill] sm:$0xff] }
 0x4d6   :  { %v1855_v4 = vpop.permute.xlu1 %1854  ;;  %v563_v45 = vmul.f32 %v3810_v7, %v4461_v25 }
 0x4d7   :  { %v1924_v60 = vmul.f32 %v3846_v42, %v1855_v4  ;;  %2084 = vrot.lane.b32.xlu0 %v1923_v29, %s2790_s24  ;;  %v4462_v4 = vld [vmem:[#allocation4_spill] sm:$0xff] }
 0x4d8   :  { %v1860_v47 = vpop.permute.xlu0 %1859 }
 0x4d9   :  { %v1925_v52 = vmul.f32 %v3851_v46, %v1860_v47  ;;  %2086 = vrot.lane.b32.xlu1 %v1924_v60, %s2790_s24  ;;  %v4463_v60 = vld [vmem:[#allocation43_spill] sm:$0xff] }
 0x4da   :  { %v1865_v34 = vpop.permute.xlu1 %1864  ;;  %v564_v47 = vmul.f32 %v4463_v60, %v4462_v4  ;;  %v4471_v60 = vld [vmem:[#allocation20_spill] sm:$0xff] }
 0x4db   :  { %v1926_v19 = vmul.f32 %v1865_v34, %v3868_v59  ;;  %2088 = vrot.lane.b32.xlu0 %v1925_v52, %s2790_s24  ;;  %v4081_v34 = vld [vmem:[%s4262_s3] ss:$0 sm:$0xff] }
 0x4dc   :  { %v1870_v15 = vpop.permute.xlu0 %1869 }
 0x4dd   :  { %v1927_v62 = vmul.f32 %v1870_v15, %v3873_v14  ;;  %2090 = vrot.lane.b32.xlu1 %v1926_v19, %s2790_s24 }
 0x4de   :  { %v1875_v6 = vpop.permute.xlu1 %1874 }
 0x4df   :  { %v1928_v42 = vmul.f32 %v3866_v2, %v1875_v6  ;;  %2092 = vrot.lane.b32.xlu0 %v1927_v62, %s2790_s24  ;;  %v4464_v62 = vld [vmem:[#allocation21_spill] sm:$0xff] }
 0x4e0   :  { %v1880_v58 = vpop.permute.xlu0 %1879  ;;  %v565_v7 = vmul.f32 %v4464_v62, %v3812_v54 }
 0x4e1   :  { %v1929_v46 = vmul.f32 %v3871_v32, %v1880_v58  ;;  %2094 = vrot.lane.b32.xlu1 %v1928_v42, %s2790_s24 }
 0x4e2   :  { %v1885_v30 = vpop.permute.xlu1 %1884 }
 0x4e3   :  { %v1930_v59 = vmul.f32 %v1885_v30, %v3888_v17  ;;  %2096 = vrot.lane.b32.xlu0 %v1929_v46, %s2790_s24 }
 0x4e4   :  { %v1890_v9 = vpop.permute.xlu0 %1889 }
 0x4e5   :  { %v1931_v14 = vmul.f32 %v1890_v9, %v3893_v31  ;;  %2098 = vrot.lane.b32.xlu1 %v1930_v59, %s2790_s24  ;;  %v4465_v59 = vld [vmem:[#allocation31_spill] sm:$0xff] }
 0x4e6   :  { %v1895_v57 = vpop.permute.xlu1 %1894  ;;  %v4466_v9 = vld [vmem:[#allocation3_spill] sm:$0xff] }
 0x4e7   :  { %v1932_v2 = vmul.f32 %v3886_v61, %v1895_v57  ;;  %2100 = vrot.lane.b32.xlu0 %v1931_v14, %s2790_s24  ;;  %v566_v14 = vmul.f32 %v4466_v9, %v4465_v59 }
 0x4e8   :  { %v1900_v20 = vpop.permute.xlu0 %1899 }
 0x4e9   :  { %v1933_v32 = vmul.f32 %v3891_v63, %v1900_v20  ;;  %2102 = vrot.lane.b32.xlu1 %v1932_v2, %s2790_s24 }
 0x4ea   :  { %v1905_v1 = vpop.permute.xlu1 %1904 }
 0x4eb   :  { %v1934_v17 = vmul.f32 %v1905_v1, %v3908_v37  ;;  %2104 = vrot.lane.b32.xlu0 %v1933_v32, %s2790_s24 }
 0x4ec   :  { %v1910_v8 = vpop.permute.xlu0 %1909 }
 0x4ed   :  { %v1935_v31 = vmul.f32 %v1910_v8, %v3913_v43  ;;  %2106 = vrot.lane.b32.xlu1 %v1934_v17, %s2790_s24  ;;  %v4467_v17 = vld [vmem:[#allocation7_spill] sm:$0xff]  ;;  %v4468_v8 = vld [vmem:[#allocation14_spill] sm:$0xff] }
 0x4ee   :  { %v1915_v28 = vpop.permute.xlu1 %1914 }
 0x4ef   :  { %v1936_v61 = vmul.f32 %v3906_v51, %v1915_v28  ;;  %2108 = vrot.lane.b32.xlu0 %v1935_v31, %s2790_s24  ;;  %v567_v31 = vmul.f32 %v4468_v8, %v4467_v17  ;;  %v4477_v17 = vld [vmem:[#allocation24_spill] sm:$0xff]  ;;  %v4478_v8 = vld [vmem:[#allocation39_spill] sm:$0xff] }
 0x4f0   :  { %v1920_v38 = vpop.permute.xlu0 %1919 }
 0x4f1   :  { %v1937_v63 = vmul.f32 %v3911_v16, %v1920_v38  ;;  %2110 = vrot.lane.b32.xlu1 %v1936_v61, %s2790_s24 }
 0x4f2   :  { %v1955_v37 = vpop.permute.xlu1 %1954 }
 0x4f3   :  { %2112 = vrot.lane.b32.xlu0 %v1937_v63, %s2790_s24  ;;  %v2131_v52 = vsel %vm2130_vm0, %v563_v45, %v1955_v37 }
 0x4f4   :  { %v1957_v21 = vpop.permute.xlu0 %1956 }
 0x4f5   :  { %v2132_v6 = vsel %vm2130_vm0, %v564_v47, %v1957_v21  ;;  %v4472_v47 = vld [vmem:[#allocation6_spill] sm:$0xff] }
 0x4f6   :  { %v1959_v55 = vpop.permute.xlu1 %1958 }
 0x4f7   :  { %v2133_v57 = vsel %vm2130_vm0, %v565_v7, %v1959_v55  ;;  %v4469_v55 = vld [vmem:[#allocation9_spill] sm:$0xff] }
 0x4f8   :  { %v1961_v35 = vpop.permute.xlu0 %1960 }
 0x4f9   :  { %v2134_v28 = vsel %vm2130_vm0, %v566_v14, %v1961_v35  ;;  %v4475_v14 = vld [vmem:[#allocation12_spill] sm:$0xff] }
 0x4fa   :  { %v4029_v10 = vpop.permute.xlu1 %1962 }
 0x4fc   :  { %v4031_v43 = vpop.permute.xlu0 %1964 }
 0x4fe   :  { %v4033_v18 = vpop.permute.xlu1 %1966 }
 0x500   :  { %v4035_v51 = vpop.permute.xlu0 %1968 }
 0x502   :  { %v4037_v44 = vpop.permute.xlu1 %1970 }
 0x504   :  { %v4039_v22 = vpop.permute.xlu0 %1972 }
 0x506   :  { %v4041_v16 = vpop.permute.xlu1 %1974 }
 0x508   :  { %v4043_v27 = vpop.permute.xlu0 %1976 }
 0x50a   :  { %v4045_v56 = vpop.permute.xlu1 %1978 }
 0x50c   :  { %v4047_v40 = vpop.permute.xlu0 %1980 }
 0x50e   :  { %v4049_v41 = vpop.permute.xlu1 %1982 }
 0x510   :  { %v4051_v13 = vpop.permute.xlu0 %1984 }
 0x527   :  { %v2019_v53 = vpop.permute.xlu1 %2018 }
 0x528   :  { %v2148_v19 = vsel %vm2147_vm1, %v2131_v52, %v2019_v53  ;;  %v4470_v53 = vld [vmem:[#allocation40_spill] sm:$0xff]  ;;  %v569_v52 = vmul.f32 %v4472_v47, %v4471_v60 }
 0x529   :  { %v2021_v48 = vpop.permute.xlu0 %2020 }
 0x52a   :  { %v2149_v58 = vsel %vm2147_vm1, %v2132_v6, %v2021_v48  ;;  %v568_v48 = vmul.f32 %v4470_v53, %v4469_v55  ;;  %v4473_v6 = vld [vmem:[#allocation28_spill] sm:$0xff] }
 0x52b   :  { %v2023_v26 = vpop.permute.xlu1 %2022 }
 0x52c   :  { %v2150_v20 = vsel %vm2147_vm1, %v2133_v57, %v2023_v26  ;;  %v2135_v26 = vsel %vm2130_vm0, %v567_v31, %v4029_v10  ;;  %v4476_v57 = vld [vmem:[#allocation13_spill] sm:$0xff]  ;;  %v572_v31 = vmul.f32 %v4478_v8, %v4477_v17 }
 0x52d   :  { %v2025_v3 = vpop.permute.xlu0 %2024 }
 0x52e   :  { %v2151_v38 = vsel %vm2147_vm1, %v2134_v28, %v2025_v3 }
 0x52f   :  { %v2027_v24 = vpop.permute.xlu1 %2026 }
 0x530   :  { %v2152_v25 = vsel %vm2147_vm1, %v2135_v26, %v2027_v24 }
 0x531   :  { %v2029_v23 = vpop.permute.xlu0 %2028 }
 0x533   :  { %v4053_v11 = vpop.permute.xlu1 %2030 }
 0x535   :  { %v4055_v5 = vpop.permute.xlu0 %2032 }
 0x537   :  { %v4057_v39 = vpop.permute.xlu1 %2034 }
 0x539   :  { %v4059_v12 = vpop.permute.xlu0 %2036 }
 0x53b   :  { %v4061_v50 = vpop.permute.xlu1 %2038 }
 0x53d   :  { %v4063_v0 = vpop.permute.xlu0 %2040 }
 0x53f   :  { %v4065_v49 = vpop.permute.xlu1 %2042 }
 0x541   :  { %v4067_v36 = vpop.permute.xlu0 %2044 }
 0x543   :  { %v4069_v33 = vpop.permute.xlu1 %2046 }
 0x545   :  { %v4073_v29 = vpop.permute.xlu0 %2048 }
 0x547   :  { %v2083_v15 = vpop.permute.xlu1 %2082 }
 0x548   :  { %v2165_v42 = vsel %vm2164_vm2, %v2148_v19, %v2083_v15  ;;  %v2136_v19 = vsel %vm2130_vm0, %v568_v48, %v4031_v43 }
 0x549   :  { %v2188_v46 = vadd.f32 %v4081_v34, %v2165_v42  ;;  %v2085_v30 = vpop.permute.xlu0 %2084  ;;  %v2153_v15 = vsel %vm2147_vm1, %v2136_v19, %v2029_v23  ;;  %v4474_v42 = vld [vmem:[#allocation5_spill] sm:$0xff]  ;;  %v4483_v19 = vld [vmem:[#allocation26_spill] sm:$0xff] }
 0x54a   :  { %v2166_v2 = vsel %vm2164_vm2, %v2149_v58, %v2085_v30  ;;  %v570_v58 = vmul.f32 %v4474_v42, %v4473_v6 }
 0x54b   :  { %v2204_v54 = vmax.f32 %v2188_v46, 0.0  ;;  %v2189_v32 = vadd.f32 %v4081_v34, %v2166_v2  ;;  %v2087_v1 = vpop.permute.xlu1 %2086  ;;  %v2137_v46 = vsel %vm2130_vm0, %v569_v52, %v4033_v18  ;;  %v571_v2 = vmul.f32 %v4476_v57, %v4475_v14 }
 0x54c   :  { %v2167_v61 = vsel %vm2164_vm2, %v2150_v20, %v2087_v1  ;;  %v2154_v23 = vsel %vm2147_vm1, %v2137_v46, %v4053_v11  ;;  %v2138_v18 = vsel %vm2130_vm0, %v570_v58, %v4035_v51 }
 0x54d   :  { %2221 = vst.msk [vmem:[%s4263_s5] sm:$0xff] %vm2220_vm3, %v2204_v54  ;;  %v2205_v63 = vmax.f32 %v2189_v32, 0.0  ;;  %v2190_v37 = vadd.f32 %v4081_v34, %v2167_v61  ;;  %v2089_v21 = vpop.permute.xlu0 %2088  ;;  %v2155_v11 = vsel %vm2147_vm1, %v2138_v18, %v4055_v5  ;;  %v2139_v51 = vsel %vm2130_vm0, %v571_v2, %v4037_v44 }
 0x54e   :  { %v2168_v35 = vsel %vm2164_vm2, %v2151_v38, %v2089_v21  ;;  %v2156_v5 = vsel %vm2147_vm1, %v2139_v51, %v4057_v39  ;;  %v4480_v21 = vld [vmem:[#allocation11_spill] sm:$0xff]  ;;  %v2140_v44 = vsel %vm2130_vm0, %v572_v31, %v4039_v22 }
 0x54f   :  { %2222 = vst.msk [vmem:[%s4263_s5 + $0x8] sm:$0xff] %vm2220_vm3, %v2205_v63  ;;  %v2206_v3 = vmax.f32 %v2190_v37, 0.0  ;;  %v2191_v45 = vadd.f32 %v4081_v34, %v2168_v35  ;;  %v2091_v4 = vpop.permute.xlu1 %2090  ;;  %v4479_v37 = vld [vmem:[#allocation44_spill] sm:$0xff]  ;;  %v2157_v39 = vsel %vm2147_vm1, %v2140_v44, %v4059_v12 }
 0x550   :  { %v2169_v10 = vsel %vm2164_vm2, %v2152_v25, %v2091_v4  ;;  %v573_v55 = vmul.f32 %v4480_v21, %v4479_v37  ;;  %v4481_v25 = vld [vmem:[#allocation19_spill] sm:$0xff] }
 0x551   :  { %2223 = vst.msk [vmem:[%s4263_s5 + $0x10] sm:$0xff] %vm2220_vm3, %v2206_v3  ;;  %v2207_v24 = vmax.f32 %v2191_v45, 0.0  ;;  %v2192_v62 = vadd.f32 %v4081_v34, %v2169_v10  ;;  %v2093_v7 = vpop.permute.xlu0 %2092  ;;  %v4482_v3 = vld [vmem:[#allocation10_spill] sm:$0xff]  ;;  %v4484_v10 = vld [vmem:[#allocation32_spill] sm:$0xff] }
 0x552   :  { %v2170_v43 = vsel %vm2164_vm2, %v2153_v15, %v2093_v7  ;;  %v574_v45 = vmul.f32 %v4482_v3, %v4481_v25  ;;  %v2141_v22 = vsel %vm2130_vm0, %v573_v55, %v4041_v16  ;;  %v575_v15 = vmul.f32 %v4484_v10, %v4483_v19 }
 0x553   :  { %2224 = vst.msk [vmem:[%s4263_s5 + $0x18] sm:$0xff] %vm2220_vm3, %v2207_v24  ;;  %v2208_v30 = vmax.f32 %v2192_v62, 0.0  ;;  %v2193_v59 = vadd.f32 %v4081_v34, %v2170_v43  ;;  %v2095_v9 = vpop.permute.xlu1 %2094  ;;  %v2158_v12 = vsel %vm2147_vm1, %v2141_v22, %v4061_v50 }
 0x554   :  { %v2171_v20 = vsel %vm2164_vm2, %v2154_v23, %v2095_v9  ;;  %v2142_v16 = vsel %vm2130_vm0, %v574_v45, %v4043_v27  ;;  %v2143_v42 = vsel %vm2130_vm0, %v575_v15, %v4045_v56  ;;  %v4485_v23 = vld [vmem:[#allocation17_spill] sm:$0xff] }
 0x555   :  { %2225 = vst.msk [vmem:[%s4263_s5 + $0x20] sm:$0xff] %vm2220_vm3, %v2208_v30  ;;  %v2209_v54 = vmax.f32 %v2193_v59, 0.0  ;;  %v2194_v32 = vadd.f32 %v4081_v34, %v2171_v20  ;;  %v2097_v1 = vpop.permute.xlu0 %2096  ;;  %v2159_v50 = vsel %vm2147_vm1, %v2142_v16, %v4063_v0  ;;  %v2160_v27 = vsel %vm2147_vm1, %v2143_v42, %v4065_v49  ;;  %v4486_v30 = vld [vmem:[#allocation25_spill] sm:$0xff] }
 0x556   :  { %v2172_v28 = vsel %vm2164_vm2, %v2155_v11, %v2097_v1  ;;  %v577_v59 = vmul.f32 %v4486_v30, %v4485_v23  ;;  %v4487_v9 = vld [vmem:[#allocation41_spill] sm:$0xff]  ;;  %v4488_v1 = vld [vmem:[#allocation2_spill] sm:$0xff] }
 0x557   :  { %2226 = vst.msk [vmem:[%s4263_s5 + $0x28] sm:$0xff] %vm2220_vm3, %v2209_v54  ;;  %v2210_v61 = vmax.f32 %v2194_v32, 0.0  ;;  %v2195_v38 = vadd.f32 %v4081_v34, %v2172_v28  ;;  %v2099_v63 = vpop.permute.xlu1 %2098  ;;  %v2144_v56 = vsel %vm2130_vm0, %v4487_v9, %v4047_v40  ;;  %v2146_v17 = vsel %vm2130_vm0, %v4488_v1, %v4051_v13 }
 0x558   :  { %v2173_v53 = vsel %vm2164_vm2, %v2156_v5, %v2099_v63  ;;  %v2161_v49 = vsel %vm2147_vm1, %v2144_v56, %v4067_v36  ;;  %v2145_v20 = vsel %vm2130_vm0, %v577_v59, %v4049_v41  ;;  %v2163_v8 = vsel %vm2147_vm1, %v2146_v17, %v4073_v29 }
 0x559   :  { %2227 = vst.msk [vmem:[%s4263_s5 + $0x30] sm:$0xff] %vm2220_vm3, %v2210_v61  ;;  %v2211_v48 = vmax.f32 %v2195_v38, 0.0  ;;  %v2196_v26 = vadd.f32 %v4081_v34, %v2173_v53  ;;  %v2101_v35 = vpop.permute.xlu0 %2100  ;;  %v2162_v40 = vsel %vm2147_vm1, %v2145_v20, %v4069_v33 }
 0x55a   :  { %v2174_v4 = vsel %vm2164_vm2, %v2157_v39, %v2101_v35 }
 0x55b   :  { %2228 = vst.msk [vmem:[%s4263_s5 + $0x38] sm:$0xff] %vm2220_vm3, %v2211_v48  ;;  %v2212_v60 = vmax.f32 %v2196_v26, 0.0  ;;  %v2197_v47 = vadd.f32 %v4081_v34, %v2174_v4  ;;  %v2103_v52 = vpop.permute.xlu1 %2102 }
 0x55c   :  { %v2175_v24 = vsel %vm2164_vm2, %v2158_v12, %v2103_v52 }
 0x55d   :  { %2229 = vst.msk [vmem:[%s4263_s5 + $0x40] sm:$0xff] %vm2220_vm3, %v2212_v60  ;;  %v2213_v62 = vmax.f32 %v2197_v47, 0.0  ;;  %v2198_v7 = vadd.f32 %v4081_v34, %v2175_v24  ;;  %v2105_v6 = vpop.permute.xlu0 %2104 }
 0x55e   :  { %v2176_v58 = vsel %vm2164_vm2, %v2159_v50, %v2105_v6 }
 0x55f   :  { %2230 = vst.msk [vmem:[%s4263_s5 + $0x48] sm:$0xff] %vm2220_vm3, %v2213_v62  ;;  %v2214_v0 = vmax.f32 %v2198_v7, 0.0  ;;  %v2199_v46 = vadd.f32 %v4081_v34, %v2176_v58  ;;  %v2107_v43 = vpop.permute.xlu1 %2106 }
 0x560   :  { %v2177_v14 = vsel %vm2164_vm2, %v2160_v27, %v2107_v43 }
 0x561   :  { %2231 = vst.msk [vmem:[%s4263_s5 + $0x50] sm:$0xff] %vm2220_vm3, %v2214_v0  ;;  %v2215_v57 = vmax.f32 %v2199_v46, 0.0  ;;  %v2200_v2 = vadd.f32 %v4081_v34, %v2177_v14  ;;  %v2109_v18 = vpop.permute.xlu0 %2108 }
 0x562   :  { %v2178_v11 = vsel %vm2164_vm2, %v2161_v49, %v2109_v18 }
 0x563   :  { %2232 = vst.msk [vmem:[%s4263_s5 + $0x58] sm:$0xff] %vm2220_vm3, %v2215_v57  ;;  %v2216_v36 = vmax.f32 %v2200_v2, 0.0  ;;  %v2201_v54 = vadd.f32 %v4081_v34, %v2178_v11  ;;  %v2111_v32 = vpop.permute.xlu1 %2110 }
 0x564   :  { %v2179_v41 = vsel %vm2164_vm2, %v2162_v40, %v2111_v32 }
 0x565   :  { %2233 = vst.msk [vmem:[%s4263_s5 + $0x60] sm:$0xff] %vm2220_vm3, %v2216_v36  ;;  %v2217_v33 = vmax.f32 %v2201_v54, 0.0  ;;  %v2202_v31 = vadd.f32 %v4081_v34, %v2179_v41  ;;  %v2113_v51 = vpop.permute.xlu0 %2112 }
 0x566   :  { %v2180_v28 = vsel %vm2164_vm2, %v2163_v8, %v2113_v51 }
 0x567   :  { %2234 = vst.msk [vmem:[%s4263_s5 + $0x68] sm:$0xff] %vm2220_vm3, %v2217_v33  ;;  %v2218_v13 = vmax.f32 %v2202_v31, 0.0  ;;  %v2203_v5 = vadd.f32 %v4081_v34, %v2180_v28 }
 0x569   :  { %2235 = vst.msk [vmem:[%s4263_s5 + $0x70] sm:$0xff] %vm2220_vm3, %v2218_v13  ;;  %v2219_v29 = vmax.f32 %v2203_v5, 0.0 }
 0x56b   :  { %2236 = vst.msk [vmem:[%s4263_s5 + $0x78] sm:$0xff] %vm2220_vm3, %v2219_v29 }

</bundles_post_ra>
